<compile_context>
chip_gen: v5e
topology: v5e:2x2
jax: 0.10.0
libtpu: 0.0.40
codegen_flags: <defaults>
</compile_context>

<pallas_src>
from functools import partial

import jax
import jax.numpy as jnp
from jax.experimental import pallas as pl
from jax.experimental.pallas import tpu as pltpu

LANE = 128
EXPANSION = 4
BN_EPS = 1e-5


# ----------------------------- helpers ------------------------------

def _round_up(n, m):
    return ((n + m - 1) // m) * m


def _pad_axis(a, axis, new_size):
    pad = new_size - a.shape[axis]
    if pad == 0:
        return a
    widths = [(0, 0)] * a.ndim
    widths[axis] = (0, pad)
    return jnp.pad(a, widths)


def _row_tile(m, target=512):
    """Fixed row tile (multiple of 8, <= target) used with a pl.cdiv grid.
    Capped at ~m/2 so the 'parallel' grid has >= 2 steps (keeps both v7x
    TensorCores busy even for small batches)."""
    half = _round_up(max(-(-m // 2), 8), 8)
    return max(8, min(target, half))


def _compiler_params():
    # Raise the scoped VMEM limit relative to the actual chip (v7x: 64 MiB
    # physical, 32 MiB scoped default) so deep-stage widths keep large tiles.
    try:
        cap = int(pltpu.get_tpu_info().vmem_capacity_bytes)
        limit = cap * 3 // 4
    except Exception:  # conservative fallback
        limit = 64 * 1024 * 1024
    return pltpu.CompilerParams(dimension_semantics=("parallel",),
                                vmem_limit_bytes=int(limit))


# ----------------------------- Pallas kernels ------------------------------

def _conv1_kernel(x_ref, w_ref, s_ref, b_ref, o_ref):
    # y1 = relu((x @ w1) * scale + shift); bf16 operands, f32 MXU accumulation.
    acc = jnp.dot(x_ref[...], w_ref[...], preferred_element_type=jnp.float32)
    acc = jnp.maximum(acc * s_ref[...] + b_ref[...], 0.0)
    o_ref[...] = acc.astype(o_ref.dtype)


def _conv3_accumulate(phases_ref, w2_ref, *, stride, oh, ow, pph):
    """3x3 conv (stride s) as 9 accumulating matmuls over unit-stride taps of
    the stride-phase planes of padded y1 (all VMEM-resident; no HBM im2col)."""
    s = stride
    acc = None
    for di in range(3):
        for dj in range(3):
            pidx = (di % s) * s + (dj % s)
            r0, c0 = di // s, dj // s
            tap = phases_ref[0,
                             pidx * pph + r0:pidx * pph + r0 + oh,
                             c0:c0 + ow, :]
            tap = tap.reshape(oh * ow, tap.shape[-1])
            part = jnp.dot(tap, w2_ref[di * 3 + dj],
                           preferred_element_type=jnp.float32)
            acc = part if acc is None else acc + part
    return acc


def _residual_branch(phases_ref, w2_ref, s2_ref, b2_ref, w3_ref, s3_ref, b3_ref,
                     *, stride, oh, ow, pph):
    y2 = _conv3_accumulate(phases_ref, w2_ref,
                           stride=stride, oh=oh, ow=ow, pph=pph)
    y2 = jnp.maximum(y2 * s2_ref[...] + b2_ref[...], 0.0).astype(jnp.bfloat16)
    res = jnp.dot(y2, w3_ref[...], preferred_element_type=jnp.float32)
    return res * s3_ref[...] + b3_ref[...]


def _tail_proj_kernel(phases_ref, sc_ref, w2_ref, s2_ref, b2_ref,
                      w3_ref, s3_ref, b3_ref, wsc_ref, ssc_ref, bsc_ref,
                      o_ref, *, stride, oh, ow, pph):
    res = _residual_branch(phases_ref, w2_ref, s2_ref, b2_ref,
                           w3_ref, s3_ref, b3_ref,
                           stride=stride, oh=oh, ow=ow, pph=pph)
    sc = jnp.dot(sc_ref[0], wsc_ref[...], preferred_element_type=jnp.float32)
    sc = sc * ssc_ref[...] + bsc_ref[...]
    o_ref[0] = jnp.maximum(res + sc, 0.0).astype(o_ref.dtype)


def _tail_id_kernel(phases_ref, sc_ref, w2_ref, s2_ref, b2_ref,
                    w3_ref, s3_ref, b3_ref, o_ref, *, stride, oh, ow, pph):
    res = _residual_branch(phases_ref, w2_ref, s2_ref, b2_ref,
                           w3_ref, s3_ref, b3_ref,
                           stride=stride, oh=oh, ow=ow, pph=pph)
    o_ref[0] = jnp.maximum(res + sc_ref[0].astype(jnp.float32), 0.0
                           ).astype(o_ref.dtype)


# ----------------------------- kernel wrappers ------------------------------

def conv1x1_bn_relu(x2d, w, scale, shift):
    # x2d: (M, cin) bf16; w: (cin, cb) bf16; out: (M, cb) bf16.
    M, K = x2d.shape
    K2, N = w.shape
    assert K == K2
    tm = _row_tile(M)
    flops = 2 * M * K * N
    bytes_accessed = (M * K + K * N + M * N) * 2 + 2 * N * 4
    return pl.pallas_call(
        _conv1_kernel,
        out_shape=jax.ShapeDtypeStruct((M, N), jnp.bfloat16),
        grid=(pl.cdiv(M, tm),),
        in_specs=[
            pl.BlockSpec((tm, K), lambda i: (i, 0)),
            pl.BlockSpec((K, N), lambda i: (0, 0)),
            pl.BlockSpec((1, N), lambda i: (0, 0)),
            pl.BlockSpec((1, N), lambda i: (0, 0)),
        ],
        out_specs=pl.BlockSpec((tm, N), lambda i: (i, 0)),
        compiler_params=_compiler_params(),
        cost_estimate=pl.CostEstimate(flops=int(flops), transcendentals=0,
                                      bytes_accessed=int(bytes_accessed)),
    )(x2d, w, scale, shift)


def bottleneck_tail(phases, sc_in, w2, s2, b2, w3, s3, b3,
                    wsc=None, ssc=None, bsc=None, *, stride, oh, ow, pph):
    B = phases.shape[0]
    cb = phases.shape[-1]
    cexp_p = w3.shape[1]
    rows = oh * ow

    def img_spec(arr):
        nd = arr.ndim
        return pl.BlockSpec((1,) + tuple(arr.shape[1:]),
                            lambda b: (b,) + (0,) * (nd - 1))

    def const_spec(arr):
        nd = arr.ndim
        return pl.BlockSpec(tuple(arr.shape), lambda b: (0,) * nd)

    args = [phases, sc_in, w2, s2, b2, w3, s3, b3]
    in_specs = [img_spec(phases), img_spec(sc_in)] + [const_spec(a) for a in args[2:]]
    if wsc is not None:
        kernel = partial(_tail_proj_kernel, stride=stride, oh=oh, ow=ow, pph=pph)
        args += [wsc, ssc, bsc]
        in_specs += [const_spec(wsc), const_spec(ssc), const_spec(bsc)]
        proj_flops = 2 * B * rows * wsc.shape[0] * cexp_p
    else:
        kernel = partial(_tail_id_kernel, stride=stride, oh=oh, ow=ow, pph=pph)
        proj_flops = 0

    flops = 2 * B * rows * (9 * cb * cb + cb * cexp_p) + proj_flops
    bytes_accessed = (sum(int(a.size) * a.dtype.itemsize for a in args)
                      + B * rows * cexp_p * 4)

    return pl.pallas_call(
        kernel,
        out_shape=jax.ShapeDtypeStruct((B, rows, cexp_p), jnp.float32),
        grid=(B,),
        in_specs=in_specs,
        out_specs=pl.BlockSpec((1, rows, cexp_p), lambda b: (b, 0, 0)),
        compiler_params=_compiler_params(),
        cost_estimate=pl.CostEstimate(flops=int(flops), transcendentals=0,
                                      bytes_accessed=int(bytes_accessed)),
    )(*args)


# ----------------------------- params ------------------------------

def init_params(key, in_channels, out_channels, stride=1):
    """PyTorch-layout weights + BatchNorm running stats (deterministic, synthetic)."""
    cexp = out_channels * EXPANSION
    ks = jax.random.split(key, 8)

    def conv_w(k, oc, ic, kh, kw):
        bound = 1.0 / jnp.sqrt(float(ic * kh * kw))
        return jax.random.uniform(k, (oc, ic, kh, kw), jnp.float32, -bound, bound)

    def bn(k, c):
        k1, k2, k3, k4 = jax.random.split(k, 4)
        return {
            "gamma": jax.random.uniform(k1, (c,), jnp.float32, 0.5, 1.5),
            "beta": jax.random.uniform(k2, (c,), jnp.float32, -0.5, 0.5),
            "mean": jax.random.uniform(k3, (c,), jnp.float32, -0.5, 0.5),
            "var": jax.random.uniform(k4, (c,), jnp.float32, 0.5, 1.5),
        }

    p = {
        "conv1_w": conv_w(ks[0], out_channels, in_channels, 1, 1),
        "bn1": bn(ks[1], out_channels),
        "conv2_w": conv_w(ks[2], out_channels, out_channels, 3, 3),
        "bn2": bn(ks[3], out_channels),
        "conv3_w": conv_w(ks[4], cexp, out_channels, 1, 1),
        "bn3": bn(ks[5], cexp),
    }
    if stride != 1 or in_channels != cexp:
        p["conv_sc_w"] = conv_w(ks[6], cexp, in_channels, 1, 1)
        p["bn_sc"] = bn(ks[7], cexp)
    return p


def _fold_bn(bn):
    scale = bn["gamma"] / jnp.sqrt(bn["var"] + BN_EPS)
    shift = bn["beta"] - bn["mean"] * scale
    return scale, shift


def prepare_params(p):
    """Fold BN -> f32 scale/shift, pre-transpose conv weights into bf16 matmul
    layout.  Only the final output channel dim (cexp) is padded to 128 lanes;
    contraction dims (cin, cb, 9*cb) stay at their real sizes."""
    cin = p["conv1_w"].shape[1]
    cb = p["conv1_w"].shape[0]
    cexp = p["conv3_w"].shape[0]
    cexp_p = _round_up(cexp, LANE)

    def vec(v, n=None):
        v = v.reshape(1, -1).astype(jnp.float32)
        return _pad_axis(v, 1, n) if n else v

    s1, b1 = _fold_bn(p["bn1"])
    s2, b2 = _fold_bn(p["bn2"])
    s3, b3 = _fold_bn(p["bn3"])

    w1 = p["conv1_w"][:, :, 0, 0].T.astype(jnp.bfloat16)                  # (cin, cb)
    # (OC, IC, 3, 3) -> (3, 3, IC, OC) -> (9, cb, cb), tap index t = di*3 + dj.
    w2 = p["conv2_w"].transpose(2, 3, 1, 0).reshape(9, cb, cb).astype(jnp.bfloat16)
    w3 = _pad_axis(p["conv3_w"][:, :, 0, 0].T, 1, cexp_p).astype(jnp.bfloat16)

    kp = {
        "w1": w1, "s1": vec(s1), "b1": vec(b1),
        "w2": w2, "s2": vec(s2), "b2": vec(b2),
        "w3": w3, "s3": vec(s3, cexp_p), "b3": vec(b3, cexp_p),
    }
    if "conv_sc_w" in p:
        ssc, bsc = _fold_bn(p["bn_sc"])
        wsc = _pad_axis(p["conv_sc_w"][:, :, 0, 0].T, 1, cexp_p).astype(jnp.bfloat16)
        kp.update({"wsc": wsc, "ssc": vec(ssc, cexp_p), "bsc": vec(bsc, cexp_p)})
    meta = dict(cin=cin, cb=cb, cexp=cexp, cexp_p=cexp_p)
    return kp, meta


# ----------------------------- forward ------------------------------

def bottleneck_forward(kp, x, *, stride, cin, cb, cexp, cexp_p):
    # x: (B, cin, H, W) NCHW float32 (same interface as the PyTorch module).
    B, C, H, W = x.shape
    assert C == cin
    s = stride
    OH = (H + 2 - 3) // s + 1
    OW = (W + 2 - 3) // s + 1

    # Boundary layout change only (hoist to network granularity in a full model):
    # NCHW f32 -> NHWC bf16 (channels on lanes, bf16 MXU operands).
    x_nhwc = x.transpose(0, 2, 3, 1).astype(jnp.bfloat16)

    # ---- kernel A: 1x1 conv + BN + ReLU (row-tiled parallel grid) ----
    y1 = conv1x1_bn_relu(x_nhwc.reshape(B * H * W, cin),
                         kp["w1"], kp["s1"], kp["b1"])
    y1 = y1.reshape(B, H, W, cb)

    # ---- stride-phase planes of the spatially padded y1 (cheap XLA glue, ~y1-sized;
    # tap (di,dj) of the 3x3/stride-s conv becomes a *unit-stride* window of plane
    # (di%s, dj%s), so the tail kernel never materializes a 9x im2col buffer). ----
    y1p = jnp.pad(y1, ((0, 0), (1, 1), (1, 1), (0, 0)))
    PPH = -(-(H + 2) // s)
    PPW = -(-(W + 2) // s)
    planes = []
    for pr in range(s):
        for pc in range(s):
            pln = y1p[:, pr::s, pc::s, :]
            pln = jnp.pad(pln, ((0, 0), (0, PPH - pln.shape[1]),
                                (0, PPW - pln.shape[2]), (0, 0)))
            planes.append(pln)
    phases = jnp.concatenate(planes, axis=1)          # (B, s*s*PPH, PPW, cb) bf16

    # ---- kernel B: 3x3+BN+ReLU, 1x1+BN, shortcut, add, ReLU (one image/step) ----
    if "wsc" in kp:                                   # projection shortcut
        sc_in = x_nhwc[:, ::s, ::s, :].reshape(B, OH * OW, cin)
        out = bottleneck_tail(phases, sc_in,
                              kp["w2"], kp["s2"], kp["b2"],
                              kp["w3"], kp["s3"], kp["b3"],
                              kp["wsc"], kp["ssc"], kp["bsc"],
                              stride=s, oh=OH, ow=OW, pph=PPH)
    else:                                             # identity shortcut
        assert s == 1 and cin == cexp, "identity shortcut needs stride=1, cin==cexp"
        sc_in = x.transpose(0, 2, 3, 1).reshape(B, H * W, cin)
        sc_in = _pad_axis(sc_in, 2, cexp_p)           # f32 residual add
        out = bottleneck_tail(phases, sc_in,
                              kp["w2"], kp["s2"], kp["b2"],
                              kp["w3"], kp["s3"], kp["b3"],
                              stride=s, oh=OH, ow=OW, pph=PPH)

    out = out.reshape(B, OH, OW, cexp_p)[..., :cexp]
    return out.transpose(0, 3, 1, 2)                  # back to NCHW f32


# ----------------------------- pure-JAX reference ------------------------------

def bottleneck_reference(p, x, stride):
    def conv(x, w, s, padding):
        return jax.lax.conv_general_dilated(
            x, w, window_strides=(s, s), padding=padding,
            dimension_numbers=("NCHW", "OIHW", "NCHW"))

    def bn(x, b):
        sc = b["gamma"] / jnp.sqrt(b["var"] + BN_EPS)
        sh = b["beta"] - b["mean"] * sc
        return x * sc[None, :, None, None] + sh[None, :, None, None]

    y = jax.nn.relu(bn(conv(x, p["conv1_w"], 1, "VALID"), p["bn1"]))
    y = jax.nn.relu(bn(conv(y, p["conv2_w"], stride, [(1, 1), (1, 1)]), p["bn2"]))
    y = bn(conv(y, p["conv3_w"], 1, "VALID"), p["bn3"])
    if "conv_sc_w" in p:
        sc = bn(conv(x, p["conv_sc_w"], stride, "VALID"), p["bn_sc"])
    else:
        sc = x
    return jax.nn.relu(y + sc)


# ----------------------------- main ------------------------------

if __name__ == "__main__":
    # in=64, bottleneck width=32 (-> expansion 128), stride=2 so the projection
    # shortcut path (and the strided 3x3 phase decomposition) are exercised.
    B, Cin, H, W = 2, 64, 16, 16
    Cb, stride = 32, 2

    key = jax.random.PRNGKey(0)
    pkey, xkey = jax.random.split(key)
    raw = init_params(pkey, Cin, Cb, stride)
    x = jax.random.normal(xkey, (B, Cin, H, W), jnp.float32)

    kp, meta = prepare_params(raw)
    fwd = jax.jit(partial(bottleneck_forward, stride=stride, **meta))
    out = jax.block_until_ready(fwd(kp, x))

    ref = jax.block_until_ready(
        jax.jit(partial(bottleneck_reference, stride=stride))(raw, x))

    assert out.shape == ref.shape == (B, Cb * EXPANSION, H // stride, W // stride)
    assert out.dtype == jnp.float32
    assert bool(jnp.isfinite(out).all())
    err = float(jnp.max(jnp.abs(out - ref)))
    tol = 5e-2 * (1.0 + float(jnp.max(jnp.abs(ref))))
    assert err <= tol, f"mismatch vs reference: max abs err {err} > {tol}"
    print("KERNEL_OK")
</pallas_src>

<mosaic_0001>
module attributes {stable_mosaic.version = 11 : i64} {
  func.func @_conv1_kernel(%arg0: i32, %arg1: memref<256x64xbf16, #tpu.memory_space<vmem>>, %arg2: memref<64x32xbf16, #tpu.memory_space<vmem>>, %arg3: memref<1x32xf32, #tpu.memory_space<vmem>>, %arg4: memref<1x32xf32, #tpu.memory_space<vmem>>, %arg5: memref<256x32xbf16, #tpu.memory_space<vmem>>) attributes {dimension_semantics = [#tpu.dimension_semantics<parallel>], iteration_bounds = array<i64: 2>, scalar_prefetch = 0 : i64, scratch_operands = 0 : i64, tpu.core_type = #tpu.core_type<tc>, window_params = [{transform_indices = @transform_0, window_bounds = array<i64: 256, 64>}, {pipeline_mode = #tpu.pipeline_mode<synchronous>, transform_indices = @transform_1, window_bounds = array<i64: 64, 32>}, {pipeline_mode = #tpu.pipeline_mode<synchronous>, transform_indices = @transform_2, window_bounds = array<i64: 1, 32>}, {pipeline_mode = #tpu.pipeline_mode<synchronous>, transform_indices = @transform_3, window_bounds = array<i64: 1, 32>}, {transform_indices = @transform_4, window_bounds = array<i64: 256, 32>}]} {
    %c0 = arith.constant 0 : index
    %c0_0 = arith.constant 0 : index
    %0 = vector.load %arg1[%c0, %c0_0] : memref<256x64xbf16, #tpu.memory_space<vmem>>, vector<256x64xbf16>
    %c0_1 = arith.constant 0 : index
    %c0_2 = arith.constant 0 : index
    %1 = vector.load %arg2[%c0_1, %c0_2] : memref<64x32xbf16, #tpu.memory_space<vmem>>, vector<64x32xbf16>
    %cst = arith.constant dense<0.000000e+00> : vector<256x32xf32>
    %2 = tpu.matmul %0, %1, %cst {dimension_numbers = #tpu.dot_dimension_numbers<[1], [0], [0], [1], [0, 0, 1, 1], [], []>} : vector<256x64xbf16>, vector<64x32xbf16>, vector<256x32xf32> -> vector<256x32xf32>
    %c0_3 = arith.constant 0 : index
    %c0_4 = arith.constant 0 : index
    %3 = vector.load %arg3[%c0_3, %c0_4] : memref<1x32xf32, #tpu.memory_space<vmem>>, vector<1x32xf32>
    %4 = vector.broadcast %3 : vector<1x32xf32> to vector<256x32xf32>
    %5 = arith.mulf %2, %4 : vector<256x32xf32>
    %c0_5 = arith.constant 0 : index
    %c0_6 = arith.constant 0 : index
    %6 = vector.load %arg4[%c0_5, %c0_6] : memref<1x32xf32, #tpu.memory_space<vmem>>, vector<1x32xf32>
    %7 = vector.broadcast %6 : vector<1x32xf32> to vector<256x32xf32>
    %8 = arith.addf %5, %7 : vector<256x32xf32>
    %cst_7 = arith.constant 0.000000e+00 : f32
    %9 = vector.broadcast %cst_7 : f32 to vector<256x32xf32>
    %10 = arith.maximumf %8, %9 : vector<256x32xf32>
    %11 = arith.truncf %10 : vector<256x32xf32> to vector<256x32xbf16>
    %c0_8 = arith.constant 0 : index
    %c0_9 = arith.constant 0 : index
    %12 = vector.load %arg5[%c0_8, %c0_9] : memref<256x32xbf16, #tpu.memory_space<vmem>>, vector<256x32xbf16>
    tpu.vector_store %arg5[%c0_8, %c0_9], %11 {strides = array<i32>} : memref<256x32xbf16, #tpu.memory_space<vmem>>, vector<256x32xbf16>,
    return
  }
  func.func @transform_0(%arg0: i32) -> (i32, i32) {
    %c0_i32 = arith.constant 0 : i32
    %c0_i32_0 = arith.constant 0 : i32
    return %arg0, %c0_i32 : i32, i32
  }
  func.func @transform_1(%arg0: i32) -> (i32, i32) {
    %c0_i32 = arith.constant 0 : i32
    %c0_i32_0 = arith.constant 0 : i32
    %c0_i32_1 = arith.constant 0 : i32
    return %c0_i32, %c0_i32_0 : i32, i32
  }
  func.func @transform_2(%arg0: i32) -> (i32, i32) {
    %c0_i32 = arith.constant 0 : i32
    %c0_i32_0 = arith.constant 0 : i32
    %c0_i32_1 = arith.constant 0 : i32
    return %c0_i32, %c0_i32_0 : i32, i32
  }
  func.func @transform_3(%arg0: i32) -> (i32, i32) {
    %c0_i32 = arith.constant 0 : i32
    %c0_i32_0 = arith.constant 0 : i32
    %c0_i32_1 = arith.constant 0 : i32
    return %c0_i32, %c0_i32_0 : i32, i32
  }
  func.func @transform_4(%arg0: i32) -> (i32, i32) {
    %c0_i32 = arith.constant 0 : i32
    %c0_i32_0 = arith.constant 0 : i32
    return %arg0, %c0_i32 : i32, i32
  }
}

module attributes {stable_mosaic.version = 11 : i64} {
  func.func @_tail_proj_kernel(%arg0: i32, %arg1: memref<1x36x9x32xbf16, #tpu.memory_space<vmem>>, %arg2: memref<1x64x64xbf16, #tpu.memory_space<vmem>>, %arg3: memref<9x32x32xbf16, #tpu.memory_space<vmem>>, %arg4: memref<1x32xf32, #tpu.memory_space<vmem>>, %arg5: memref<1x32xf32, #tpu.memory_space<vmem>>, %arg6: memref<32x128xbf16, #tpu.memory_space<vmem>>, %arg7: memref<1x128xf32, #tpu.memory_space<vmem>>, %arg8: memref<1x128xf32, #tpu.memory_space<vmem>>, %arg9: memref<64x128xbf16, #tpu.memory_space<vmem>>, %arg10: memref<1x128xf32, #tpu.memory_space<vmem>>, %arg11: memref<1x128xf32, #tpu.memory_space<vmem>>, %arg12: memref<1x64x128xf32, #tpu.memory_space<vmem>>) attributes {dimension_semantics = [#tpu.dimension_semantics<parallel>], iteration_bounds = array<i64: 2>, scalar_prefetch = 0 : i64, scratch_operands = 0 : i64, tpu.core_type = #tpu.core_type<tc>, window_params = [{transform_indices = @transform_0, window_bounds = array<i64: 1, 36, 9, 32>}, {transform_indices = @transform_1, window_bounds = array<i64: 1, 64, 64>}, {pipeline_mode = #tpu.pipeline_mode<synchronous>, transform_indices = @transform_2, window_bounds = array<i64: 9, 32, 32>}, {pipeline_mode = #tpu.pipeline_mode<synchronous>, transform_indices = @transform_3, window_bounds = array<i64: 1, 32>}, {pipeline_mode = #tpu.pipeline_mode<synchronous>, transform_indices = @transform_4, window_bounds = array<i64: 1, 32>}, {pipeline_mode = #tpu.pipeline_mode<synchronous>, transform_indices = @transform_5, window_bounds = array<i64: 32, 128>}, {pipeline_mode = #tpu.pipeline_mode<synchronous>, transform_indices = @transform_6, window_bounds = array<i64: 1, 128>}, {pipeline_mode = #tpu.pipeline_mode<synchronous>, transform_indices = @transform_7, window_bounds = array<i64: 1, 128>}, {pipeline_mode = #tpu.pipeline_mode<synchronous>, transform_indices = @transform_8, window_bounds = array<i64: 64, 128>}, {pipeline_mode = #tpu.pipeline_mode<synchronous>, transform_indices = @transform_9, window_bounds = array<i64: 1, 128>}, {pipeline_mode = #tpu.pipeline_mode<synchronous>, transform_indices = @transform_10, window_bounds = array<i64: 1, 128>}, {transform_indices = @transform_11, window_bounds = array<i64: 1, 64, 128>}]} {
    %c0 = arith.constant 0 : index
    %c0_0 = arith.constant 0 : index
    %c0_1 = arith.constant 0 : index
    %c0_2 = arith.constant 0 : index
    %0 = vector.load %arg1[%c0, %c0_0, %c0_1, %c0_2] : memref<1x36x9x32xbf16, #tpu.memory_space<vmem>>, vector<1x8x8x32xbf16>
    %1 = vector.shape_cast %0 : vector<1x8x8x32xbf16> to vector<8x8x32xbf16>
    %2 = vector.shape_cast %1 : vector<8x8x32xbf16> to vector<64x32xbf16>
    %c0_3 = arith.constant 0 : index
    %c0_4 = arith.constant 0 : index
    %c0_5 = arith.constant 0 : index
    %3 = vector.load %arg3[%c0_3, %c0_4, %c0_5] : memref<9x32x32xbf16, #tpu.memory_space<vmem>>, vector<1x32x32xbf16>
    %4 = vector.shape_cast %3 : vector<1x32x32xbf16> to vector<32x32xbf16>
    %cst = arith.constant dense<0.000000e+00> : vector<64x32xf32>
    %5 = tpu.matmul %2, %4, %cst {dimension_numbers = #tpu.dot_dimension_numbers<[1], [0], [0], [1], [0, 0, 1, 1], [], []>} : vector<64x32xbf16>, vector<32x32xbf16>, vector<64x32xf32> -> vector<64x32xf32>
    %c0_6 = arith.constant 0 : index
    %c9 = arith.constant 9 : index
    %c0_7 = arith.constant 0 : index
    %c0_8 = arith.constant 0 : index
    %6 = vector.load %arg1[%c0_6, %c9, %c0_7, %c0_8] : memref<1x36x9x32xbf16, #tpu.memory_space<vmem>>, vector<1x8x8x32xbf16>
    %7 = vector.shape_cast %6 : vector<1x8x8x32xbf16> to vector<8x8x32xbf16>
    %8 = vector.shape_cast %7 : vector<8x8x32xbf16> to vector<64x32xbf16>
    %c1 = arith.constant 1 : index
    %c0_9 = arith.constant 0 : index
    %c0_10 = arith.constant 0 : index
    %9 = vector.load %arg3[%c1, %c0_9, %c0_10] : memref<9x32x32xbf16, #tpu.memory_space<vmem>>, vector<1x32x32xbf16>
    %10 = vector.shape_cast %9 : vector<1x32x32xbf16> to vector<32x32xbf16>
    %cst_11 = arith.constant dense<0.000000e+00> : vector<64x32xf32>
    %11 = tpu.matmul %8, %10, %cst_11 {dimension_numbers = #tpu.dot_dimension_numbers<[1], [0], [0], [1], [0, 0, 1, 1], [], []>} : vector<64x32xbf16>, vector<32x32xbf16>, vector<64x32xf32> -> vector<64x32xf32>
    %12 = arith.addf %5, %11 : vector<64x32xf32>
    %c0_12 = arith.constant 0 : index
    %c0_13 = arith.constant 0 : index
    %c1_14 = arith.constant 1 : index
    %c0_15 = arith.constant 0 : index
    %13 = vector.load %arg1[%c0_12, %c0_13, %c1_14, %c0_15] : memref<1x36x9x32xbf16, #tpu.memory_space<vmem>>, vector<1x8x8x32xbf16>
    %14 = vector.shape_cast %13 : vector<1x8x8x32xbf16> to vector<8x8x32xbf16>
    %15 = vector.shape_cast %14 : vector<8x8x32xbf16> to vector<64x32xbf16>
    %c2 = arith.constant 2 : index
    %c0_16 = arith.constant 0 : index
    %c0_17 = arith.constant 0 : index
    %16 = vector.load %arg3[%c2, %c0_16, %c0_17] : memref<9x32x32xbf16, #tpu.memory_space<vmem>>, vector<1x32x32xbf16>
    %17 = vector.shape_cast %16 : vector<1x32x32xbf16> to vector<32x32xbf16>
    %cst_18 = arith.constant dense<0.000000e+00> : vector<64x32xf32>
    %18 = tpu.matmul %15, %17, %cst_18 {dimension_numbers = #tpu.dot_dimension_numbers<[1], [0], [0], [1], [0, 0, 1, 1], [], []>} : vector<64x32xbf16>, vector<32x32xbf16>, vector<64x32xf32> -> vector<64x32xf32>
    %19 = arith.addf %12, %18 : vector<64x32xf32>
    %c0_19 = arith.constant 0 : index
    %c18 = arith.constant 18 : index
    %c0_20 = arith.constant 0 : index
    %c0_21 = arith.constant 0 : index
    %20 = vector.load %arg1[%c0_19, %c18, %c0_20, %c0_21] : memref<1x36x9x32xbf16, #tpu.memory_space<vmem>>, vector<1x8x8x32xbf16>
    %21 = vector.shape_cast %20 : vector<1x8x8x32xbf16> to vector<8x8x32xbf16>
    %22 = vector.shape_cast %21 : vector<8x8x32xbf16> to vector<64x32xbf16>
    %c3 = arith.constant 3 : index
    %c0_22 = arith.constant 0 : index
    %c0_23 = arith.constant 0 : index
    %23 = vector.load %arg3[%c3, %c0_22, %c0_23] : memref<9x32x32xbf16, #tpu.memory_space<vmem>>, vector<1x32x32xbf16>
    %24 = vector.shape_cast %23 : vector<1x32x32xbf16> to vector<32x32xbf16>
    %cst_24 = arith.constant dense<0.000000e+00> : vector<64x32xf32>
    %25 = tpu.matmul %22, %24, %cst_24 {dimension_numbers = #tpu.dot_dimension_numbers<[1], [0], [0], [1], [0, 0, 1, 1], [], []>} : vector<64x32xbf16>, vector<32x32xbf16>, vector<64x32xf32> -> vector<64x32xf32>
    %26 = arith.addf %19, %25 : vector<64x32xf32>
    %c0_25 = arith.constant 0 : index
    %c27 = arith.constant 27 : index
    %c0_26 = arith.constant 0 : index
    %c0_27 = arith.constant 0 : index
    %27 = vector.load %arg1[%c0_25, %c27, %c0_26, %c0_27] : memref<1x36x9x32xbf16, #tpu.memory_space<vmem>>, vector<1x8x8x32xbf16>
    %28 = vector.shape_cast %27 : vector<1x8x8x32xbf16> to vector<8x8x32xbf16>
    %29 = vector.shape_cast %28 : vector<8x8x32xbf16> to vector<64x32xbf16>
    %c4 = arith.constant 4 : index
    %c0_28 = arith.constant 0 : index
    %c0_29 = arith.constant 0 : index
    %30 = vector.load %arg3[%c4, %c0_28, %c0_29] : memref<9x32x32xbf16, #tpu.memory_space<vmem>>, vector<1x32x32xbf16>
    %31 = vector.shape_cast %30 : vector<1x32x32xbf16> to vector<32x32xbf16>
    %cst_30 = arith.constant dense<0.000000e+00> : vector<64x32xf32>
    %32 = tpu.matmul %29, %31, %cst_30 {dimension_numbers = #tpu.dot_dimension_numbers<[1], [0], [0], [1], [0, 0, 1, 1], [], []>} : vector<64x32xbf16>, vector<32x32xbf16>, vector<64x32xf32> -> vector<64x32xf32>
    %33 = arith.addf %26, %32 : vector<64x32xf32>
    %c0_31 = arith.constant 0 : index
    %c18_32 = arith.constant 18 : index
    %c1_33 = arith.constant 1 : index
    %c0_34 = arith.constant 0 : index
    %34 = vector.load %arg1[%c0_31, %c18_32, %c1_33, %c0_34] : memref<1x36x9x32xbf16, #tpu.memory_space<vmem>>, vector<1x8x8x32xbf16>
    %35 = vector.shape_cast %34 : vector<1x8x8x32xbf16> to vector<8x8x32xbf16>
    %36 = vector.shape_cast %35 : vector<8x8x32xbf16> to vector<64x32xbf16>
    %c5 = arith.constant 5 : index
    %c0_35 = arith.constant 0 : index
    %c0_36 = arith.constant 0 : index
    %37 = vector.load %arg3[%c5, %c0_35, %c0_36] : memref<9x32x32xbf16, #tpu.memory_space<vmem>>, vector<1x32x32xbf16>
    %38 = vector.shape_cast %37 : vector<1x32x32xbf16> to vector<32x32xbf16>
    %cst_37 = arith.constant dense<0.000000e+00> : vector<64x32xf32>
    %39 = tpu.matmul %36, %38, %cst_37 {dimension_numbers = #tpu.dot_dimension_numbers<[1], [0], [0], [1], [0, 0, 1, 1], [], []>} : vector<64x32xbf16>, vector<32x32xbf16>, vector<64x32xf32> -> vector<64x32xf32>
    %40 = arith.addf %33, %39 : vector<64x32xf32>
    %c0_38 = arith.constant 0 : index
    %c1_39 = arith.constant 1 : index
    %c0_40 = arith.constant 0 : index
    %c0_41 = arith.constant 0 : index
    %41 = vector.load %arg1[%c0_38, %c1_39, %c0_40, %c0_41] : memref<1x36x9x32xbf16, #tpu.memory_space<vmem>>, vector<1x8x8x32xbf16>
    %42 = vector.shape_cast %41 : vector<1x8x8x32xbf16> to vector<8x8x32xbf16>
    %43 = vector.shape_cast %42 : vector<8x8x32xbf16> to vector<64x32xbf16>
    %c6 = arith.constant 6 : index
    %c0_42 = arith.constant 0 : index
    %c0_43 = arith.constant 0 : index
    %44 = vector.load %arg3[%c6, %c0_42, %c0_43] : memref<9x32x32xbf16, #tpu.memory_space<vmem>>, vector<1x32x32xbf16>
    %45 = vector.shape_cast %44 : vector<1x32x32xbf16> to vector<32x32xbf16>
    %cst_44 = arith.constant dense<0.000000e+00> : vector<64x32xf32>
    %46 = tpu.matmul %43, %45, %cst_44 {dimension_numbers = #tpu.dot_dimension_numbers<[1], [0], [0], [1], [0, 0, 1, 1], [], []>} : vector<64x32xbf16>, vector<32x32xbf16>, vector<64x32xf32> -> vector<64x32xf32>
    %47 = arith.addf %40, %46 : vector<64x32xf32>
    %c0_45 = arith.constant 0 : index
    %c10 = arith.constant 10 : index
    %c0_46 = arith.constant 0 : index
    %c0_47 = arith.constant 0 : index
    %48 = vector.load %arg1[%c0_45, %c10, %c0_46, %c0_47] : memref<1x36x9x32xbf16, #tpu.memory_space<vmem>>, vector<1x8x8x32xbf16>
    %49 = vector.shape_cast %48 : vector<1x8x8x32xbf16> to vector<8x8x32xbf16>
    %50 = vector.shape_cast %49 : vector<8x8x32xbf16> to vector<64x32xbf16>
    %c7 = arith.constant 7 : index
    %c0_48 = arith.constant 0 : index
    %c0_49 = arith.constant 0 : index
    %51 = vector.load %arg3[%c7, %c0_48, %c0_49] : memref<9x32x32xbf16, #tpu.memory_space<vmem>>, vector<1x32x32xbf16>
    %52 = vector.shape_cast %51 : vector<1x32x32xbf16> to vector<32x32xbf16>
    %cst_50 = arith.constant dense<0.000000e+00> : vector<64x32xf32>
    %53 = tpu.matmul %50, %52, %cst_50 {dimension_numbers = #tpu.dot_dimension_numbers<[1], [0], [0], [1], [0, 0, 1, 1], [], []>} : vector<64x32xbf16>, vector<32x32xbf16>, vector<64x32xf32> -> vector<64x32xf32>
    %54 = arith.addf %47, %53 : vector<64x32xf32>
    %c0_51 = arith.constant 0 : index
    %c1_52 = arith.constant 1 : index
    %c1_53 = arith.constant 1 : index
    %c0_54 = arith.constant 0 : index
    %55 = vector.load %arg1[%c0_51, %c1_52, %c1_53, %c0_54] : memref<1x36x9x32xbf16, #tpu.memory_space<vmem>>, vector<1x8x8x32xbf16>
    %56 = vector.shape_cast %55 : vector<1x8x8x32xbf16> to vector<8x8x32xbf16>
    %57 = vector.shape_cast %56 : vector<8x8x32xbf16> to vector<64x32xbf16>
    %c8 = arith.constant 8 : index
    %c0_55 = arith.constant 0 : index
    %c0_56 = arith.constant 0 : index
    %58 = vector.load %arg3[%c8, %c0_55, %c0_56] : memref<9x32x32xbf16, #tpu.memory_space<vmem>>, vector<1x32x32xbf16>
    %59 = vector.shape_cast %58 : vector<1x32x32xbf16> to vector<32x32xbf16>
    %cst_57 = arith.constant dense<0.000000e+00> : vector<64x32xf32>
    %60 = tpu.matmul %57, %59, %cst_57 {dimension_numbers = #tpu.dot_dimension_numbers<[1], [0], [0], [1], [0, 0, 1, 1], [], []>} : vector<64x32xbf16>, vector<32x32xbf16>, vector<64x32xf32> -> vector<64x32xf32>
    %61 = arith.addf %54, %60 : vector<64x32xf32>
    %c0_58 = arith.constant 0 : index
    %c0_59 = arith.constant 0 : index
    %62 = vector.load %arg4[%c0_58, %c0_59] : memref<1x32xf32, #tpu.memory_space<vmem>>, vector<1x32xf32>
    %63 = vector.broadcast %62 : vector<1x32xf32> to vector<64x32xf32>
    %64 = arith.mulf %61, %63 : vector<64x32xf32>
    %c0_60 = arith.constant 0 : index
    %c0_61 = arith.constant 0 : index
    %65 = vector.load %arg5[%c0_60, %c0_61] : memref<1x32xf32, #tpu.memory_space<vmem>>, vector<1x32xf32>
    %66 = vector.broadcast %65 : vector<1x32xf32> to vector<64x32xf32>
    %67 = arith.addf %64, %66 : vector<64x32xf32>
    %cst_62 = arith.constant 0.000000e+00 : f32
    %68 = vector.broadcast %cst_62 : f32 to vector<64x32xf32>
    %69 = arith.maximumf %67, %68 : vector<64x32xf32>
    %70 = arith.truncf %69 : vector<64x32xf32> to vector<64x32xbf16>
    %c0_63 = arith.constant 0 : index
    %c0_64 = arith.constant 0 : index
    %71 = vector.load %arg6[%c0_63, %c0_64] : memref<32x128xbf16, #tpu.memory_space<vmem>>, vector<32x128xbf16>
    %cst_65 = arith.constant dense<0.000000e+00> : vector<64x128xf32>
    %72 = tpu.matmul %70, %71, %cst_65 {dimension_numbers = #tpu.dot_dimension_numbers<[1], [0], [0], [1], [0, 0, 1, 1], [], []>} : vector<64x32xbf16>, vector<32x128xbf16>, vector<64x128xf32> -> vector<64x128xf32>
    %c0_66 = arith.constant 0 : index
    %c0_67 = arith.constant 0 : index
    %73 = vector.load %arg7[%c0_66, %c0_67] : memref<1x128xf32, #tpu.memory_space<vmem>>, vector<1x128xf32>
    %74 = vector.broadcast %73 : vector<1x128xf32> to vector<64x128xf32>
    %75 = arith.mulf %72, %74 : vector<64x128xf32>
    %c0_68 = arith.constant 0 : index
    %c0_69 = arith.constant 0 : index
    %76 = vector.load %arg8[%c0_68, %c0_69] : memref<1x128xf32, #tpu.memory_space<vmem>>, vector<1x128xf32>
    %77 = vector.broadcast %76 : vector<1x128xf32> to vector<64x128xf32>
    %78 = arith.addf %75, %77 : vector<64x128xf32>
    %c0_70 = arith.constant 0 : index
    %c0_71 = arith.constant 0 : index
    %c0_72 = arith.constant 0 : index
    %79 = vector.load %arg2[%c0_70, %c0_71, %c0_72] : memref<1x64x64xbf16, #tpu.memory_space<vmem>>, vector<1x64x64xbf16>
    %80 = vector.shape_cast %79 : vector<1x64x64xbf16> to vector<64x64xbf16>
    %c0_73 = arith.constant 0 : index
    %c0_74 = arith.constant 0 : index
    %81 = vector.load %arg9[%c0_73, %c0_74] : memref<64x128xbf16, #tpu.memory_space<vmem>>, vector<64x128xbf16>
    %cst_75 = arith.constant dense<0.000000e+00> : vector<64x128xf32>
    %82 = tpu.matmul %80, %81, %cst_75 {dimension_numbers = #tpu.dot_dimension_numbers<[1], [0], [0], [1], [0, 0, 1, 1], [], []>} : vector<64x64xbf16>, vector<64x128xbf16>, vector<64x128xf32> -> vector<64x128xf32>
    %c0_76 = arith.constant 0 : index
    %c0_77 = arith.constant 0 : index
    %83 = vector.load %arg10[%c0_76, %c0_77] : memref<1x128xf32, #tpu.memory_space<vmem>>, vector<1x128xf32>
    %84 = vector.broadcast %83 : vector<1x128xf32> to vector<64x128xf32>
    %85 = arith.mulf %82, %84 : vector<64x128xf32>
    %c0_78 = arith.constant 0 : index
    %c0_79 = arith.constant 0 : index
    %86 = vector.load %arg11[%c0_78, %c0_79] : memref<1x128xf32, #tpu.memory_space<vmem>>, vector<1x128xf32>
    %87 = vector.broadcast %86 : vector<1x128xf32> to vector<64x128xf32>
    %88 = arith.addf %85, %87 : vector<64x128xf32>
    %89 = arith.addf %78, %88 : vector<64x128xf32>
    %cst_80 = arith.constant 0.000000e+00 : f32
    %90 = vector.broadcast %cst_80 : f32 to vector<64x128xf32>
    %91 = arith.maximumf %89, %90 : vector<64x128xf32>
    %c0_81 = arith.constant 0 : index
    %c0_82 = arith.constant 0 : index
    %c0_83 = arith.constant 0 : index
    %92 = vector.load %arg12[%c0_81, %c0_82, %c0_83] : memref<1x64x128xf32, #tpu.memory_space<vmem>>, vector<1x64x128xf32>
    %93 = vector.shape_cast %92 : vector<1x64x128xf32> to vector<64x128xf32>
    %94 = vector.shape_cast %91 : vector<64x128xf32> to vector<1x64x128xf32>
    tpu.vector_store %arg12[%c0_81, %c0_82, %c0_83], %94 {strides = array<i32>} : memref<1x64x128xf32, #tpu.memory_space<vmem>>, vector<1x64x128xf32>,
    return
  }
  func.func @transform_0(%arg0: i32) -> (i32, i32, i32, i32) {
    %c0_i32 = arith.constant 0 : i32
    %c0_i32_0 = arith.constant 0 : i32
    %c0_i32_1 = arith.constant 0 : i32
    %c0_i32_2 = arith.constant 0 : i32
    return %arg0, %c0_i32, %c0_i32_0, %c0_i32_1 : i32, i32, i32, i32
  }
  func.func @transform_1(%arg0: i32) -> (i32, i32, i32) {
    %c0_i32 = arith.constant 0 : i32
    %c0_i32_0 = arith.constant 0 : i32
    %c0_i32_1 = arith.constant 0 : i32
    return %arg0, %c0_i32, %c0_i32_0 : i32, i32, i32
  }
  func.func @transform_2(%arg0: i32) -> (i32, i32, i32) {
    %c0_i32 = arith.constant 0 : i32
    %c0_i32_0 = arith.constant 0 : i32
    %c0_i32_1 = arith.constant 0 : i32
    %c0_i32_2 = arith.constant 0 : i32
    return %c0_i32, %c0_i32_0, %c0_i32_1 : i32, i32, i32
  }
  func.func @transform_3(%arg0: i32) -> (i32, i32) {
    %c0_i32 = arith.constant 0 : i32
    %c0_i32_0 = arith.constant 0 : i32
    %c0_i32_1 = arith.constant 0 : i32
    return %c0_i32, %c0_i32_0 : i32, i32
  }
  func.func @transform_4(%arg0: i32) -> (i32, i32) {
    %c0_i32 = arith.constant 0 : i32
    %c0_i32_0 = arith.constant 0 : i32
    %c0_i32_1 = arith.constant 0 : i32
    return %c0_i32, %c0_i32_0 : i32, i32
  }
  func.func @transform_5(%arg0: i32) -> (i32, i32) {
    %c0_i32 = arith.constant 0 : i32
    %c0_i32_0 = arith.constant 0 : i32
    %c0_i32_1 = arith.constant 0 : i32
    return %c0_i32, %c0_i32_0 : i32, i32
  }
  func.func @transform_6(%arg0: i32) -> (i32, i32) {
    %c0_i32 = arith.constant 0 : i32
    %c0_i32_0 = arith.constant 0 : i32
    %c0_i32_1 = arith.constant 0 : i32
    return %c0_i32, %c0_i32_0 : i32, i32
  }
  func.func @transform_7(%arg0: i32) -> (i32, i32) {
    %c0_i32 = arith.constant 0 : i32
    %c0_i32_0 = arith.constant 0 : i32
    %c0_i32_1 = arith.constant 0 : i32
    return %c0_i32, %c0_i32_0 : i32, i32
  }
  func.func @transform_8(%arg0: i32) -> (i32, i32) {
    %c0_i32 = arith.constant 0 : i32
    %c0_i32_0 = arith.constant 0 : i32
    %c0_i32_1 = arith.constant 0 : i32
    return %c0_i32, %c0_i32_0 : i32, i32
  }
  func.func @transform_9(%arg0: i32) -> (i32, i32) {
    %c0_i32 = arith.constant 0 : i32
    %c0_i32_0 = arith.constant 0 : i32
    %c0_i32_1 = arith.constant 0 : i32
    return %c0_i32, %c0_i32_0 : i32, i32
  }
  func.func @transform_10(%arg0: i32) -> (i32, i32) {
    %c0_i32 = arith.constant 0 : i32
    %c0_i32_0 = arith.constant 0 : i32
    %c0_i32_1 = arith.constant 0 : i32
    return %c0_i32, %c0_i32_0 : i32, i32
  }
  func.func @transform_11(%arg0: i32) -> (i32, i32, i32) {
    %c0_i32 = arith.constant 0 : i32
    %c0_i32_0 = arith.constant 0 : i32
    %c0_i32_1 = arith.constant 0 : i32
    return %arg0, %c0_i32, %c0_i32_0 : i32, i32, i32
  }
}

</mosaic_0001>

<bundles_post_ra>
// kernel: bottleneck_forward.2
= control target key start
LH: loop header
LB: loop body
LE: loop exit
PB: predicated region body
PF: predicated region fallthrough
CT: control target
= control target key end

     0   :  { %s891_s15 = smov 0   ;;  %s1101_s0 = inlined_call_operand.vmem [shape: bf16[512,64], index: 0, kind: input, shape index: {}]   ;;  %s1102_s1 = inlined_call_operand.vmem [shape: bf16[64,32], index: 1, kind: input, shape index: {}]   ;;  %s1103_s2 = inlined_call_operand.vmem [shape: f32[1,32], index: 2, kind: input, shape index: {}]   ;;  %s1104_s3 = inlined_call_operand.vmem [shape: f32[1,32], index: 3, kind: input, shape index: {}]   ;;  %s1105_s4 = inlined_call_operand.vmem [shape: bf16[512,32], index: 4, kind: output, shape index: {}]  }
   0x1 LB: > { %s709_s16 = sadd.s32 4294967295, %s864_s15   ;;  %p713_p0 = scmp.ge.s32.totalorder %s864_s15, 1  ;;  %s864_s15 = sphi %s891_s15, %s14_s15  }
   0x2   : > { %p163_p1 = scmp.lt.s32.totalorder %s864_s15, 3 }
   0x4   : > { %p164_p2 = pnand %p713_p0, %p163_p1 }
   0x5   : > { %s714_s19 = sshll.u32 (!%p164_p2), %s709_s16, 5 }
   0x6   : > { %167 = sbr.rel (%p164_p2) target bundleno = 226 (0xe2), region = 36  ;;  %p190_p3 = scmp.lt.s32.totalorder (!%p164_p2), %s714_s19, 63 }
   0xb   : > { %v835_v0 = vld [vmem:[%s1102_s1 + $0x18] sm:$0xff]  ;;  %v834_v1 = vld [vmem:[%s1102_s1 + $0x10] sm:$0xff]  ;;  %s1107_s19 = smov (!%p190_p3, %s714_s19), 63  ;;  %v833_v2 = vld [vmem:[%s1102_s1 + $0x8] sm:$0xff]  ;;  %vm346_vm0 = vcmask 523264   ;;  %vm620_vm1 = vcmask 257024  }
   0xc   : > { %399 = vmatpush.bf16.msra.mxu0 %v835_v0  ;;  %836 = vmatpush.bf16.msra.mxu1 %v835_v0  ;;  %s715_s24 = sshll.u32 %s1107_s19, 2  ;;  %v832_v3 = vld [vmem:[%s1102_s1] sm:$0xff] }
   0xd   : > { %837 = vmatpush.bf16.msra.mxu2 %v835_v0  ;;  %838 = vmatpush.bf16.msra.mxu3 %v835_v0  ;;  %s919_s29 = scalar_lea.vmem %s1101_s0, %s715_s24  ;;  %v956_v20 = vld [vmem:[%s1103_s2] ss:$0 sm:$0xff]  ;;  %s972_s10 = scalar_lea.vmem %s1105_s4, %s715_s24 }
   0xe   : > { %v816_v4 = vld [vmem:[%s919_s29] sm:$0xff]  ;;  %v817_v8 = vld [vmem:[%s919_s29 + $0x8] sm:$0xff]  ;;  %v818_v12 = vld [vmem:[%s919_s29 + $0x10] sm:$0xff] }
   0xf   : > { %v820_v5 = vld [vmem:[%s919_s29 + $0x20] sm:$0xff]  ;;  %v821_v9 = vld [vmem:[%s919_s29 + $0x28] sm:$0xff]  ;;  %v822_v13 = vld [vmem:[%s919_s29 + $0x30] sm:$0xff] }
  0x10   : > { %400 = vmatpush.bf16.msra.mxu0 %v834_v1  ;;  %839 = vmatpush.bf16.msra.mxu1 %v834_v1  ;;  %v824_v6 = vld [vmem:[%s919_s29 + $0x40] sm:$0xff]  ;;  %v825_v10 = vld [vmem:[%s919_s29 + $0x48] sm:$0xff]  ;;  %v826_v14 = vld [vmem:[%s919_s29 + $0x50] sm:$0xff] }
  0x11   : > { %840 = vmatpush.bf16.msra.mxu2 %v834_v1  ;;  %841 = vmatpush.bf16.msra.mxu3 %v834_v1  ;;  %v828_v7 = vld [vmem:[%s919_s29 + $0x60] sm:$0xff]  ;;  %v829_v11 = vld [vmem:[%s919_s29 + $0x68] sm:$0xff]  ;;  %v830_v15 = vld [vmem:[%s919_s29 + $0x70] sm:$0xff] }
  0x12   : > { %v819_v16 = vld [vmem:[%s919_s29 + $0x18] sm:$0xff]  ;;  %v961_v21 = vld [vmem:[%s1104_s3] ss:$0 sm:$0xff] }
  0x13   : > { %v823_v17 = vld [vmem:[%s919_s29 + $0x38] sm:$0xff] }
  0x14   : > { %401 = vmatpush.bf16.msra.mxu0 %v833_v2  ;;  %842 = vmatpush.bf16.msra.mxu1 %v833_v2  ;;  %v827_v18 = vld [vmem:[%s919_s29 + $0x58] sm:$0xff] }
  0x15   : > { %843 = vmatpush.bf16.msra.mxu2 %v833_v2  ;;  %844 = vmatpush.bf16.msra.mxu3 %v833_v2  ;;  %v831_v19 = vld [vmem:[%s919_s29 + $0x78] sm:$0xff] }
  0x18   : > { %402 = vmatpush.bf16.msra.mxu0 %v832_v3  ;;  %845 = vmatpush.bf16.msra.mxu1 %v832_v3 }
  0x19   : > { %846 = vmatpush.bf16.msra.mxu2 %v832_v3  ;;  %847 = vmatpush.bf16.msra.mxu3 %v832_v3 }
  0x1b   : > { %798 = vmatmul.msk.bf16.vlgmr.msra.gmra.mxu0 %vm346_vm0, %v816_v4  ;;  %802 = vmatmul.msk.bf16.vlgmr.msra.gmra.mxu1 %vm346_vm0, %v820_v5 }
  0x1c   : > { %806 = vmatmul.msk.bf16.vlgmr.msra.gmra.mxu2 %vm346_vm0, %v824_v6  ;;  %810 = vmatmul.msk.bf16.vlgmr.msra.gmra.mxu3 %vm346_vm0, %v828_v7 }
  0x2b   : > { %799 = vmatmul.msk.bf16.gmra.mxu0 %vm346_vm0, %v817_v8  ;;  %803 = vmatmul.msk.bf16.gmra.mxu1 %vm346_vm0, %v821_v9 }
  0x2c   : > { %807 = vmatmul.msk.bf16.gmra.mxu2 %vm346_vm0, %v825_v10  ;;  %811 = vmatmul.msk.bf16.gmra.mxu3 %vm346_vm0, %v829_v11 }
  0x3b   : > { %800 = vmatmul.msk.bf16.gmra.mxu0 %vm346_vm0, %v818_v12  ;;  %804 = vmatmul.msk.bf16.gmra.mxu1 %vm346_vm0, %v822_v13 }
  0x3c   : > { %808 = vmatmul.msk.bf16.gmra.mxu2 %vm346_vm0, %v826_v14  ;;  %812 = vmatmul.msk.bf16.gmra.mxu3 %vm346_vm0, %v830_v15 }
  0x4b   : > { %801 = vmatmul.msk.bf16.gmra.mxu0 %vm346_vm0, %v819_v16  ;;  %805 = vmatmul.msk.bf16.gmra.mxu1 %vm346_vm0, %v823_v17 }
  0x4c   : > { %809 = vmatmul.msk.bf16.gmra.mxu2 %vm346_vm0, %v827_v18  ;;  %813 = vmatmul.msk.bf16.gmra.mxu3 %vm346_vm0, %v831_v19 }
  0x98   : > { %v404_v22 = vpop.f32.mrf.mxu0  ;;  %v424_v23 = vpop.f32.mrf.mxu1 }
  0x99   : > { %v488_v24 = vmul.f32 %v956_v20, %v404_v22  ;;  %v496_v25 = vmul.f32 %v956_v20, %v424_v23 }
  0x9b   : > { %v524_v26 = vadd.f32 %v961_v21, %v488_v24  ;;  %v532_v27 = vadd.f32 %v961_v21, %v496_v25 }
  0x9d   : > { %v556_v28 = vmax.f32 %v524_v26, 0.0  ;;  %v564_v29 = vmax.f32 %v532_v27, 0.0 }
  0x9f   : > { %v588_v30 = vpack.c.bf16 %v556_v28, %v556_v28  ;;  %v596_v31 = vpack.c.bf16 %v564_v29, %v564_v29  ;;  %v444_v32 = vpop.f32.mrf.mxu2  ;;  %v464_v33 = vpop.f32.mrf.mxu3 }
  0xa0   : > { %v504_v34 = vmul.f32 %v956_v20, %v444_v32  ;;  %v512_v35 = vmul.f32 %v956_v20, %v464_v33  ;;  %v406_v36 = vpop.f32.mrf.mxu0  ;;  %v426_v37 = vpop.f32.mrf.mxu1 }
  0xa1   : > { %621 = vst.msk [vmem:[%s972_s10] sm:$0xf] %vm620_vm1, %v588_v30  ;;  %v489_v38 = vmul.f32 %v956_v20, %v406_v36  ;;  %v497_v39 = vmul.f32 %v956_v20, %v426_v37 }
  0xa2   : > { %629 = vst.msk [vmem:[%s972_s10 + $0x20] sm:$0xf] %vm620_vm1, %v596_v31  ;;  %v540_v40 = vadd.f32 %v961_v21, %v504_v34  ;;  %v548_v41 = vadd.f32 %v961_v21, %v512_v35 }
  0xa3   : > { %v525_v42 = vadd.f32 %v961_v21, %v489_v38  ;;  %v533_v43 = vadd.f32 %v961_v21, %v497_v39 }
  0xa4   : > { %v572_v44 = vmax.f32 %v540_v40, 0.0  ;;  %v580_v45 = vmax.f32 %v548_v41, 0.0 }
  0xa5   : > { %v557_v46 = vmax.f32 %v525_v42, 0.0  ;;  %v565_v47 = vmax.f32 %v533_v43, 0.0 }
  0xa6   : > { %v604_v48 = vpack.c.bf16 %v572_v44, %v572_v44  ;;  %v612_v49 = vpack.c.bf16 %v580_v45, %v580_v45 }
  0xa7   : > { %v589_v50 = vpack.c.bf16 %v557_v46, %v557_v46  ;;  %v597_v51 = vpack.c.bf16 %v565_v47, %v565_v47  ;;  %v446_v52 = vpop.f32.mrf.mxu2  ;;  %v466_v53 = vpop.f32.mrf.mxu3 }
  0xa8   : > { %637 = vst.msk [vmem:[%s972_s10 + $0x40] sm:$0xf] %vm620_vm1, %v604_v48  ;;  %v505_v54 = vmul.f32 %v956_v20, %v446_v52  ;;  %v513_v55 = vmul.f32 %v956_v20, %v466_v53  ;;  %v409_v56 = vpop.f32.mrf.mxu0  ;;  %v429_v57 = vpop.f32.mrf.mxu1 }
  0xa9   : > { %645 = vst.msk [vmem:[%s972_s10 + $0x60] sm:$0xf] %vm620_vm1, %v612_v49  ;;  %v490_v58 = vmul.f32 %v956_v20, %v409_v56  ;;  %v498_v59 = vmul.f32 %v956_v20, %v429_v57 }
  0xaa   : > { %622 = vst.msk [vmem:[%s972_s10 + $0x4] sm:$0xf] %vm620_vm1, %v589_v50  ;;  %v541_v60 = vadd.f32 %v961_v21, %v505_v54  ;;  %v549_v61 = vadd.f32 %v961_v21, %v513_v55 }
  0xab   : > { %630 = vst.msk [vmem:[%s972_s10 + $0x24] sm:$0xf] %vm620_vm1, %v597_v51  ;;  %v526_v62 = vadd.f32 %v961_v21, %v490_v58  ;;  %v534_v63 = vadd.f32 %v961_v21, %v498_v59 }
  0xac   : > { %v573_v0 = vmax.f32 %v541_v60, 0.0  ;;  %v581_v1 = vmax.f32 %v549_v61, 0.0 }
  0xad   : > { %v558_v2 = vmax.f32 %v526_v62, 0.0  ;;  %v566_v3 = vmax.f32 %v534_v63, 0.0 }
  0xae   : > { %v605_v4 = vpack.c.bf16 %v573_v0, %v573_v0  ;;  %v613_v5 = vpack.c.bf16 %v581_v1, %v581_v1 }
  0xaf   : > { %v590_v6 = vpack.c.bf16 %v558_v2, %v558_v2  ;;  %v598_v7 = vpack.c.bf16 %v566_v3, %v566_v3  ;;  %v449_v8 = vpop.f32.mrf.mxu2  ;;  %v469_v9 = vpop.f32.mrf.mxu3 }
  0xb0   : > { %638 = vst.msk [vmem:[%s972_s10 + $0x44] sm:$0xf] %vm620_vm1, %v605_v4  ;;  %v506_v10 = vmul.f32 %v956_v20, %v449_v8  ;;  %v514_v11 = vmul.f32 %v956_v20, %v469_v9  ;;  %v411_v12 = vpop.f32.mrf.mxu0  ;;  %v431_v13 = vpop.f32.mrf.mxu1 }
  0xb1   : > { %646 = vst.msk [vmem:[%s972_s10 + $0x64] sm:$0xf] %vm620_vm1, %v613_v5  ;;  %v491_v14 = vmul.f32 %v956_v20, %v411_v12  ;;  %v499_v15 = vmul.f32 %v956_v20, %v431_v13 }
  0xb2   : > { %623 = vst.msk [vmem:[%s972_s10 + $0x8] sm:$0xf] %vm620_vm1, %v590_v6  ;;  %v542_v16 = vadd.f32 %v961_v21, %v506_v10  ;;  %v550_v17 = vadd.f32 %v961_v21, %v514_v11 }
  0xb3   : > { %631 = vst.msk [vmem:[%s972_s10 + $0x28] sm:$0xf] %vm620_vm1, %v598_v7  ;;  %v527_v18 = vadd.f32 %v961_v21, %v491_v14  ;;  %v535_v19 = vadd.f32 %v961_v21, %v499_v15 }
  0xb4   : > { %v574_v22 = vmax.f32 %v542_v16, 0.0  ;;  %v582_v23 = vmax.f32 %v550_v17, 0.0 }
  0xb5   : > { %v559_v24 = vmax.f32 %v527_v18, 0.0  ;;  %v567_v25 = vmax.f32 %v535_v19, 0.0 }
  0xb6   : > { %v606_v26 = vpack.c.bf16 %v574_v22, %v574_v22  ;;  %v614_v27 = vpack.c.bf16 %v582_v23, %v582_v23 }
  0xb7   : > { %v591_v28 = vpack.c.bf16 %v559_v24, %v559_v24  ;;  %v599_v29 = vpack.c.bf16 %v567_v25, %v567_v25  ;;  %v451_v30 = vpop.f32.mrf.mxu2  ;;  %v471_v31 = vpop.f32.mrf.mxu3 }
  0xb8   : > { %639 = vst.msk [vmem:[%s972_s10 + $0x48] sm:$0xf] %vm620_vm1, %v606_v26  ;;  %v507_v32 = vmul.f32 %v956_v20, %v451_v30  ;;  %v515_v33 = vmul.f32 %v956_v20, %v471_v31  ;;  %v414_v34 = vpop.f32.mrf.mxu0  ;;  %v434_v35 = vpop.f32.mrf.mxu1 }
  0xb9   : > { %647 = vst.msk [vmem:[%s972_s10 + $0x68] sm:$0xf] %vm620_vm1, %v614_v27  ;;  %v492_v36 = vmul.f32 %v956_v20, %v414_v34  ;;  %v500_v37 = vmul.f32 %v956_v20, %v434_v35 }
  0xba   : > { %624 = vst.msk [vmem:[%s972_s10 + $0xc] sm:$0xf] %vm620_vm1, %v591_v28  ;;  %v543_v38 = vadd.f32 %v961_v21, %v507_v32  ;;  %v551_v39 = vadd.f32 %v961_v21, %v515_v33 }
  0xbb   : > { %632 = vst.msk [vmem:[%s972_s10 + $0x2c] sm:$0xf] %vm620_vm1, %v599_v29  ;;  %v528_v40 = vadd.f32 %v961_v21, %v492_v36  ;;  %v536_v41 = vadd.f32 %v961_v21, %v500_v37 }
  0xbc   : > { %v575_v42 = vmax.f32 %v543_v38, 0.0  ;;  %v583_v43 = vmax.f32 %v551_v39, 0.0 }
  0xbd   : > { %v560_v44 = vmax.f32 %v528_v40, 0.0  ;;  %v568_v45 = vmax.f32 %v536_v41, 0.0 }
  0xbe   : > { %v607_v46 = vpack.c.bf16 %v575_v42, %v575_v42  ;;  %v615_v47 = vpack.c.bf16 %v583_v43, %v583_v43 }
  0xbf   : > { %v592_v48 = vpack.c.bf16 %v560_v44, %v560_v44  ;;  %v600_v49 = vpack.c.bf16 %v568_v45, %v568_v45  ;;  %v454_v50 = vpop.f32.mrf.mxu2  ;;  %v474_v51 = vpop.f32.mrf.mxu3 }
  0xc0   : > { %640 = vst.msk [vmem:[%s972_s10 + $0x4c] sm:$0xf] %vm620_vm1, %v607_v46  ;;  %v508_v52 = vmul.f32 %v956_v20, %v454_v50  ;;  %v516_v53 = vmul.f32 %v956_v20, %v474_v51  ;;  %v416_v54 = vpop.f32.mrf.mxu0  ;;  %v436_v55 = vpop.f32.mrf.mxu1 }
  0xc1   : > { %648 = vst.msk [vmem:[%s972_s10 + $0x6c] sm:$0xf] %vm620_vm1, %v615_v47  ;;  %v493_v56 = vmul.f32 %v956_v20, %v416_v54  ;;  %v501_v57 = vmul.f32 %v956_v20, %v436_v55 }
  0xc2   : > { %625 = vst.msk [vmem:[%s972_s10 + $0x10] sm:$0xf] %vm620_vm1, %v592_v48  ;;  %v544_v58 = vadd.f32 %v961_v21, %v508_v52  ;;  %v552_v59 = vadd.f32 %v961_v21, %v516_v53 }
  0xc3   : > { %633 = vst.msk [vmem:[%s972_s10 + $0x30] sm:$0xf] %vm620_vm1, %v600_v49  ;;  %v529_v60 = vadd.f32 %v961_v21, %v493_v56  ;;  %v537_v61 = vadd.f32 %v961_v21, %v501_v57 }
  0xc4   : > { %v576_v62 = vmax.f32 %v544_v58, 0.0  ;;  %v584_v63 = vmax.f32 %v552_v59, 0.0 }
  0xc5   : > { %v561_v0 = vmax.f32 %v529_v60, 0.0  ;;  %v569_v1 = vmax.f32 %v537_v61, 0.0 }
  0xc6   : > { %v608_v2 = vpack.c.bf16 %v576_v62, %v576_v62  ;;  %v616_v3 = vpack.c.bf16 %v584_v63, %v584_v63 }
  0xc7   : > { %v593_v4 = vpack.c.bf16 %v561_v0, %v561_v0  ;;  %v601_v5 = vpack.c.bf16 %v569_v1, %v569_v1  ;;  %v456_v6 = vpop.f32.mrf.mxu2  ;;  %v476_v7 = vpop.f32.mrf.mxu3 }
  0xc8   : > { %641 = vst.msk [vmem:[%s972_s10 + $0x50] sm:$0xf] %vm620_vm1, %v608_v2  ;;  %v509_v8 = vmul.f32 %v956_v20, %v456_v6  ;;  %v517_v9 = vmul.f32 %v956_v20, %v476_v7  ;;  %v419_v10 = vpop.f32.mrf.mxu0  ;;  %v439_v11 = vpop.f32.mrf.mxu1 }
  0xc9   : > { %649 = vst.msk [vmem:[%s972_s10 + $0x70] sm:$0xf] %vm620_vm1, %v616_v3  ;;  %v494_v12 = vmul.f32 %v956_v20, %v419_v10  ;;  %v502_v13 = vmul.f32 %v956_v20, %v439_v11 }
  0xca   : > { %626 = vst.msk [vmem:[%s972_s10 + $0x14] sm:$0xf] %vm620_vm1, %v593_v4  ;;  %v545_v14 = vadd.f32 %v961_v21, %v509_v8  ;;  %v553_v15 = vadd.f32 %v961_v21, %v517_v9 }
  0xcb   : > { %634 = vst.msk [vmem:[%s972_s10 + $0x34] sm:$0xf] %vm620_vm1, %v601_v5  ;;  %v530_v16 = vadd.f32 %v961_v21, %v494_v12  ;;  %v538_v17 = vadd.f32 %v961_v21, %v502_v13 }
  0xcc   : > { %v577_v18 = vmax.f32 %v545_v14, 0.0  ;;  %v585_v19 = vmax.f32 %v553_v15, 0.0 }
  0xcd   : > { %v562_v22 = vmax.f32 %v530_v16, 0.0  ;;  %v570_v23 = vmax.f32 %v538_v17, 0.0 }
  0xce   : > { %v609_v24 = vpack.c.bf16 %v577_v18, %v577_v18  ;;  %v617_v25 = vpack.c.bf16 %v585_v19, %v585_v19 }
  0xcf   : > { %v594_v26 = vpack.c.bf16 %v562_v22, %v562_v22  ;;  %v602_v27 = vpack.c.bf16 %v570_v23, %v570_v23  ;;  %v459_v28 = vpop.f32.mrf.mxu2  ;;  %v479_v29 = vpop.f32.mrf.mxu3 }
  0xd0   : > { %642 = vst.msk [vmem:[%s972_s10 + $0x54] sm:$0xf] %vm620_vm1, %v609_v24  ;;  %v510_v30 = vmul.f32 %v956_v20, %v459_v28  ;;  %v518_v31 = vmul.f32 %v956_v20, %v479_v29  ;;  %v421_v32 = vpop.f32.mrf.mxu0  ;;  %v441_v33 = vpop.f32.mrf.mxu1 }
  0xd1   : > { %650 = vst.msk [vmem:[%s972_s10 + $0x74] sm:$0xf] %vm620_vm1, %v617_v25  ;;  %v495_v34 = vmul.f32 %v956_v20, %v421_v32  ;;  %v503_v35 = vmul.f32 %v956_v20, %v441_v33 }
  0xd2   : > { %627 = vst.msk [vmem:[%s972_s10 + $0x18] sm:$0xf] %vm620_vm1, %v594_v26  ;;  %v546_v36 = vadd.f32 %v961_v21, %v510_v30  ;;  %v554_v37 = vadd.f32 %v961_v21, %v518_v31 }
  0xd3   : > { %635 = vst.msk [vmem:[%s972_s10 + $0x38] sm:$0xf] %vm620_vm1, %v602_v27  ;;  %v531_v38 = vadd.f32 %v961_v21, %v495_v34  ;;  %v539_v39 = vadd.f32 %v961_v21, %v503_v35 }
  0xd4   : > { %v578_v40 = vmax.f32 %v546_v36, 0.0  ;;  %v586_v41 = vmax.f32 %v554_v37, 0.0 }
  0xd5   : > { %v563_v42 = vmax.f32 %v531_v38, 0.0  ;;  %v571_v43 = vmax.f32 %v539_v39, 0.0 }
  0xd6   : > { %v610_v44 = vpack.c.bf16 %v578_v40, %v578_v40  ;;  %v618_v45 = vpack.c.bf16 %v586_v41, %v586_v41 }
  0xd7   : > { %v595_v46 = vpack.c.bf16 %v563_v42, %v563_v42  ;;  %v603_v47 = vpack.c.bf16 %v571_v43, %v571_v43  ;;  %v461_v48 = vpop.f32.mrf.mxu2  ;;  %v481_v49 = vpop.f32.mrf.mxu3 }
  0xd8   : > { %643 = vst.msk [vmem:[%s972_s10 + $0x58] sm:$0xf] %vm620_vm1, %v610_v44  ;;  %v511_v50 = vmul.f32 %v956_v20, %v461_v48  ;;  %v519_v51 = vmul.f32 %v956_v20, %v481_v49 }
  0xd9   : > { %651 = vst.msk [vmem:[%s972_s10 + $0x78] sm:$0xf] %vm620_vm1, %v618_v45 }
  0xda   : > { %628 = vst.msk [vmem:[%s972_s10 + $0x1c] sm:$0xf] %vm620_vm1, %v595_v46  ;;  %v547_v52 = vadd.f32 %v961_v21, %v511_v50  ;;  %v555_v53 = vadd.f32 %v961_v21, %v519_v51 }
  0xdb   : > { %636 = vst.msk [vmem:[%s972_s10 + $0x3c] sm:$0xf] %vm620_vm1, %v603_v47 }
  0xdc   : > { %v579_v54 = vmax.f32 %v547_v52, 0.0  ;;  %v587_v55 = vmax.f32 %v555_v53, 0.0 }
  0xde   : > { %v611_v56 = vpack.c.bf16 %v579_v54, %v579_v54  ;;  %v619_v57 = vpack.c.bf16 %v587_v55, %v587_v55 }
  0xe0   : > { %644 = vst.msk [vmem:[%s972_s10 + $0x5c] sm:$0xf] %vm620_vm1, %v611_v56 }
  0xe1   : > { %652 = vst.msk [vmem:[%s972_s10 + $0x7c] sm:$0xf] %vm620_vm1, %v619_v57 }
  0xe2 PF: > { %s14_s15 = sadd.s32 1, %s864_s15  }
  0xe3   : > { %p11_p4 = scmp.ge.s32.totalorder %s14_s15, 4  }
  0xe5   :  { %13 = sbr.rel (!%p11_p4) target bundleno = 1 (0x1), region = 66 }

// kernel: bottleneck_forward.3
= control target key start
LH: loop header
LB: loop body
LE: loop exit
PB: predicated region body
PF: predicated region fallthrough
CT: control target
= control target key end

     0   :  { %s3050_s0 = inlined_call_operand.vmem [shape: bf16[2,36,9,32], index: 0, kind: input, shape index: {}]   ;;  %s3051_s1 = inlined_call_operand.vmem [shape: bf16[2,64,64], index: 1, kind: input, shape index: {}]   ;;  %s3052_s2 = inlined_call_operand.vmem [shape: bf16[9,32,32], index: 2, kind: input, shape index: {}]   ;;  %s3053_s3 = inlined_call_operand.vmem [shape: f32[1,32], index: 3, kind: input, shape index: {}]   ;;  %s3054_s4 = inlined_call_operand.vmem [shape: f32[1,32], index: 4, kind: input, shape index: {}]   ;;  %s3055_s5 = inlined_call_operand.vmem [shape: bf16[32,128], index: 5, kind: input, shape index: {}]   ;;  %s3056_s6 = inlined_call_operand.vmem [shape: f32[1,128], index: 6, kind: input, shape index: {}]   ;;  %s3057_s7 = inlined_call_operand.vmem [shape: f32[1,128], index: 7, kind: input, shape index: {}]   ;;  %s3058_s8 = inlined_call_operand.vmem [shape: bf16[64,128], index: 8, kind: input, shape index: {}]   ;;  %s3059_s9 = inlined_call_operand.vmem [shape: f32[1,128], index: 9, kind: input, shape index: {}]   ;;  %s3060_s10 = inlined_call_operand.vmem [shape: f32[1,128], index: 10, kind: input, shape index: {}]   ;;  %s3061_s11 = inlined_call_operand.hbm [shape: f32[2,64,128], index: 11, kind: output, shape index: {}]  }
   0x1   :  { %3062 = sst [smem:[#allocation5_spill]] %s3050_s0 }
   0x2   :  { %16 = vsyncpa [#allocation3], 0 }
   0x3   :  { %18 = vsyncpa [#allocation3 + $0x1], 0  ;;  %s2540_s17 = smov 0   ;;  %s2542_s18 = smov 0  }
   0x4   :  { %s2544_s19 = smov 0   ;;  %s2546_s20 = smov 0  }
   0x5 LB: > { %s2561_s21 = sadd.s32 4294967295, %s2476_s20   ;;  %s1937_s22 = sadd.s32 4294967294, %s2476_s20   ;;  %s2476_s20 = sphi %s2546_s20, %s3071_s20   ;;  %s2472_s19 = sphi %s2544_s19, %s3070_s19   ;;  %s2468_s18 = sphi %s2542_s18, %s3069_s18   ;;  %s2464_s17 = sphi %s2540_s17, %s3068_s17  }
   0x6   : > { %s2565_s23 = sadd.s32 1, %s2476_s20   ;;  %s272_s24 = sadd.s32 1, %s2472_s19 }
   0x7   : > { %s269_s25 = ssub.s32 %s2476_s20, %s2565_s23  ;;  %p282_p0 = scmp.ne.s32.totalorder %s2472_s19, %s2468_s18 }
   0x8   : > { %p270_p1 = scmp.eq.s32.totalorder %s269_s25, 0  ;;  %p283_p2 = scmp.eq.s32.totalorder %s2561_s21, 1 }
   0x9   : > { %p288_p3 = scmp.ne.s32.totalorder %s2468_s18, %s2464_s17  ;;  %p289_p4 = scmp.eq.s32.totalorder %s1937_s22, 1 }
   0xa   : > { %s2576_s26 = scalar_select %p270_p1, %s2472_s19, %s272_s24  }
   0xb   : > { %p2578_p5 = por %p283_p2, %p282_p0  ;;  %p2582_p6 = por %p289_p4, %p288_p3 }
   0xc   : > { %p1940_p7 = scmp.ge.s32.totalorder %s2476_s20, 1  ;;  %p350_p8 = scmp.lt.s32.totalorder %s2476_s20, 3 }
   0xe   : > { %p351_p9 = pnand %p1940_p7, %p350_p8 }
   0xf   : > { %p395_p10 = scmp.lt.s32.totalorder (!%p351_p9), %s2561_s21, 1  ;;  %s3065_s0 = sld [smem:[#allocation5_spill]] (!%p351_p9) }
  0x10   : > { %354 = sbr.rel (%p351_p9) target bundleno = 489 (0x1e9), region = 64  ;;  %s392_s15 = sand.u32 (!%p351_p9), 1, %s2468_s18  }
  0x11   : > { %s1941_s16 = sshll.u32 (!%p351_p9), %s392_s15, 6  ;;  %s2434_s30 = scalar_lea.hbm (!%p351_p9), %s3061_s11, 128 }
  0x12   : > { %s2979_s22 = scalar_lea.vmem (!%p351_p9), [#allocation2], %s1941_s16 }
  0x15   : > { %v2318_v0 = vld [vmem:[%s3052_s2 + $0x18] sm:$0xff]  ;;  %v2312_v1 = vld [vmem:[%s3052_s2 + $0x8] sm:$0xff]  ;;  %v2317_v3 = vld [vmem:[%s3052_s2 + $0x10] sm:$0xff]  ;;  %s2602_s24 = scalar_select %p395_p10, %s2561_s21, 1  ;;  %vm464_vm0 = vcmask 261120   ;;  %vm1757_vm4 = vcmask 523264  }
  0x16   : > { %v2320_v2 = vld [vmem:[%s3052_s2 + $0x28] sm:$0xff]  ;;  %483 = vmatpush.bf16.msra.mxu0 %v2318_v0  ;;  %2360 = vmatpush.bf16.msra.mxu3 %v2318_v0  ;;  %v2326_v4 = vld [vmem:[%s3052_s2 + $0x38] sm:$0xff]  ;;  %v2311_v5 = vld [vmem:[%s3052_s2] sm:$0xff]  ;;  %vm595_vm1 = vsmask.f32 3328 }
  0x17   : > { %2362 = vmatpush.bf16.msra.mxu1 %v2312_v1  ;;  %2364 = vmatpush.bf16.msra.mxu2 %v2320_v2  ;;  %s2366_s13 = smul.u32 288, %s2602_s24  ;;  %v2614_v6 = vld [vmem:[%s3052_s2 + $0x20] sm:$0xff]  ;;  %v2325_v7 = vld [vmem:[%s3052_s2 + $0x30] sm:$0xff]  ;;  %vm596_vm2 = vsmask.f32 7440  ;;  %s2306_s29 = sshll.u32 %s2602_s24, 5 }
  0x18   : > { %vm2642_vm3 = vmor %vm595_vm1, %vm596_vm2 }
  0x19   : > { %s2619_s25 = scalar_lea.vmem %s3065_s0, %s2366_s13  ;;  %s2887_s13 = scalar_lea.vmem %s3051_s1, %s2306_s29 }
  0x1a   : > { %484 = vmatpush.bf16.msra.mxu0 %v2317_v3  ;;  %2361 = vmatpush.bf16.msra.mxu3 %v2317_v3  ;;  %v1959_v8 = vld [vmem:[%s2619_s25 + $0x48] sm:$0xf]  ;;  %v2313_v9 = vld [vmem:[%s2619_s25 + $0x4c] sm:$0xf0]  ;;  %v1963_v10 = vld [vmem:[%s2619_s25 + $0x58] sm:$0xf] }
  0x1b   : > { %2363 = vmatpush.bf16.msra.mxu1 %v2311_v5  ;;  %v1960_v11 = vor.u32 %v2313_v9, %v1959_v8  ;;  %v2314_v12 = vld [vmem:[%s2619_s25 + $0x5c] sm:$0xf0]  ;;  %v1991_v13 = vld [vmem:[%s2619_s25 + $0x10] sm:$0xf]  ;;  %v2308_v14 = vld [vmem:[%s2619_s25 + $0x14] sm:$0xf0]  ;;  %2365 = vmatpush.bf16.msra.mxu2 %v2614_v6 }
  0x1c   : > { %v1964_v15 = vor.u32 %v2314_v12, %v1963_v10  ;;  %v1992_v16 = vor.u32 %v2308_v14, %v1991_v13  ;;  %v583_v17 = vld [vmem:[%s2619_s25 + $0x10] sm:$0xf]  ;;  %v584_v18 = vld [vmem:[%s2619_s25 + $0x14] sm:$0x1]  ;;  %v585_v19 = vld [vmem:[%s2619_s25 + $0x18] sm:$0xf] }
  0x1d   : > { %1981 = vmatmul.msk.bf16.vlgmr.msra.gmra.mxu0 %vm464_vm0, %v1960_v11  ;;  %v586_v20 = vld [vmem:[%s2619_s25 + $0x1c] sm:$0x1]  ;;  %v627_v21 = vshrl.u32 %v583_v17, 16  ;;  %v630_v22 = vshll.u32 %v583_v17, 16  ;;  %v636_v23 = vshll.u32 %v584_v18, 16  ;;  %v641_v24 = vshrl.u32 %v585_v19, 16 }
  0x1e   : > { %852 = vmatpush.bf16.msrb.mxu3 %v2326_v4  ;;  %556 = vmatpush.bf16.msrb.mxu0 %v2312_v1  ;;  %v644_v25 = vshll.u32 %v585_v19, 16  ;;  %v650_v26 = vshll.u32 %v586_v20, 16  ;;  %v1967_v34 = vld [vmem:[%s2619_s25 + $0x68] sm:$0xf]  ;;  %v2315_v35 = vld [vmem:[%s2619_s25 + $0x6c] sm:$0xf0] }
  0x1f   : > { %1982 = vmatmul.msk.bf16.vlgmr.msra.gmra.mxu3 %vm464_vm0, %v1964_v15  ;;  %2010 = vmatmul.msk.bf16.vlgmr.msra.gmra.mxu1 %vm464_vm0, %v1992_v16  ;;  %v629_v27 = vrot.slane %v627_v21, 4  ;;  %v632_v28 = vrot.slane %v630_v22, 5  ;;  %v643_v29 = vrot.slane %v641_v24, 4  ;;  %v638_v32 = vrot.slane %v636_v23, 5  ;;  %v587_v36 = vld [vmem:[%s2619_s25 + $0x20] sm:$0xf] }
  0x20   : > { %v646_v30 = vrot.slane %v644_v25, 5  ;;  %v652_v33 = vrot.slane %v650_v26, 5  ;;  %v588_v39 = vld [vmem:[%s2619_s25 + $0x24] sm:$0x1]  ;;  %v589_v40 = vld [vmem:[%s2619_s25 + $0x28] sm:$0xf]  ;;  %v1968_v61 = vor.u32 %v2315_v35, %v1967_v34 }
  0x21   : > { %v633_v31 = vor.u32 %v632_v28, %v629_v27  ;;  %v655_v41 = vshrl.u32 %v587_v36, 16  ;;  %v658_v42 = vshll.u32 %v587_v36, 16  ;;  %v1987_v44 = vld [vmem:[%s2619_s25] sm:$0xf]  ;;  %v2307_v45 = vld [vmem:[%s2619_s25 + $0x4] sm:$0xf0] }
  0x22   : > { %557 = vmatpush.bf16.msrb.mxu0 %v2311_v5  ;;  %853 = vmatpush.bf16.msrb.mxu3 %v2325_v7  ;;  %v647_v38 = vor.u32 %v646_v30, %v643_v29  ;;  %v1995_v46 = vld [vmem:[%s2619_s25 + $0x20] sm:$0xf]  ;;  %v2309_v47 = vld [vmem:[%s2619_s25 + $0x24] sm:$0xf0]  ;;  %v669_v48 = vshrl.u32 %v589_v40, 16  ;;  %v672_v49 = vshll.u32 %v589_v40, 16  ;;  %v1988_v5 = vor.u32 %v2307_v45, %v1987_v44 }
  0x23   : > { %v634_v43 = vrot.slane %v633_v31, 4  ;;  %v590_v51 = vld [vmem:[%s2619_s25 + $0x2c] sm:$0x1]  ;;  %v657_v52 = vrot.slane %v655_v41, 4  ;;  %v660_v53 = vrot.slane %v658_v42, 5  ;;  %v664_v55 = vshll.u32 %v588_v39, 16 }
  0x24   : > { %v648_v50 = vrot.slane %v647_v38, 4  ;;  %v671_v56 = vrot.slane %v669_v48, 4  ;;  %v674_v57 = vrot.slane %v672_v49, 5  ;;  %v579_v58 = vld [vmem:[%s2619_s25] sm:$0xf]  ;;  %v2332_v22 = vld [vmem:[%s3052_s2 + $0x48] sm:$0xff] }
  0x25   : > { %v639_v54 = vsel %vm2642_vm3, %v634_v43, %v638_v32  ;;  %v661_v62 = vor.u32 %v660_v53, %v657_v52  ;;  %v581_v63 = vld [vmem:[%s2619_s25 + $0x8] sm:$0xf]  ;;  %v580_v3 = vld [vmem:[%s2619_s25 + $0x4] sm:$0x1]  ;;  %v599_v4 = vshrl.u32 %v579_v58, 16  ;;  %v602_v8 = vshll.u32 %v579_v58, 16 }
  0x26   : > { %757 = vmatpush.bf16.msra.mxu0 %v2320_v2  ;;  %v653_v59 = vsel %vm2642_vm3, %v648_v50, %v652_v33  ;;  %v717_v60 = vunpack.c.l.b16 %v639_v54  ;;  %v675_v1 = vor.u32 %v674_v57, %v671_v56  ;;  %v678_v2 = vshll.u32 %v590_v51, 16  ;;  %v582_v7 = vld [vmem:[%s2619_s25 + $0xc] sm:$0x1]  ;;  %v591_v24 = vld [vmem:[%s2619_s25 + $0x30] sm:$0xf]  ;;  %v2346_v31 = vld [vmem:[%s3052_s2 + $0x78] sm:$0xff] }
  0x27   : > { %v718_v0 = vunpack.c.l.b16 %v653_v59  ;;  %v613_v9 = vshrl.u32 %v581_v63, 16  ;;  %v666_v11 = vrot.slane %v664_v55, 5  ;;  %v601_v12 = vrot.slane %v599_v4, 4  ;;  %v593_v26 = vld [vmem:[%s2619_s25 + $0x38] sm:$0xf]  ;;  %v2331_v36 = vld [vmem:[%s3052_s2 + $0x40] sm:$0xff]  ;;  %1343 = vmatpush.bf16.msra.mxu3 %v2346_v31 }
  0x28   : > { %v616_v13 = vshll.u32 %v581_v63, 16  ;;  %v662_v14 = vrot.slane %v661_v62, 4  ;;  %v604_v15 = vrot.slane %v602_v8, 5  ;;  %v608_v16 = vshll.u32 %v580_v3, 16  ;;  %v2334_v38 = vld [vmem:[%s3052_s2 + $0x58] sm:$0xff]  ;;  %v2340_v39 = vld [vmem:[%s3052_s2 + $0x68] sm:$0xff] }
  0x29   : > { %v724_v10 = vpack.c.b16 %v718_v0, %v717_v60  ;;  %v615_v17 = vrot.slane %v613_v9, 4  ;;  %v676_v18 = vrot.slane %v675_v1, 4  ;;  %v680_v19 = vrot.slane %v678_v2, 5  ;;  %1153 = vmatpush.bf16.msrb.mxu1 %v2334_v38  ;;  %1248 = vmatpush.bf16.msrb.mxu2 %v2340_v39  ;;  %v2333_v42 = vld [vmem:[%s3052_s2 + $0x50] sm:$0xff]  ;;  %v2339_v43 = vld [vmem:[%s3052_s2 + $0x60] sm:$0xff] }
  0x2a   : > { %758 = vmatpush.bf16.msra.mxu0 %v2614_v6  ;;  %v1996_v6 = vor.u32 %v2309_v47, %v1995_v46  ;;  %v618_v20 = vrot.slane %v616_v13, 5  ;;  %v622_v21 = vshll.u32 %v582_v7, 16  ;;  %v605_v23 = vor.u32 %v604_v15, %v601_v12  ;;  %v2109_v44 = vld [vmem:[%s2619_s25 + $0x90] sm:$0xf]  ;;  %v2111_v49 = vld [vmem:[%s2619_s25 + $0x98] sm:$0xf] }
  0x2b   : > { %2026 = vmatmul.msk.bf16.vlgmr.msra.gmra.mxu2 %vm464_vm0, %v724_v10  ;;  %v667_v27 = vsel %vm2642_vm3, %v662_v14, %v666_v11  ;;  %v610_v29 = vrot.slane %v608_v16, 5  ;;  %v681_v32 = vsel %vm2642_vm3, %v676_v18, %v680_v19  ;;  %v683_v34 = vshrl.u32 %v591_v24, 16  ;;  %v592_v60 = vld [vmem:[%s2619_s25 + $0x34] sm:$0x1]  ;;  %v1971_v63 = vld [vmem:[%s2619_s25 + $0x78] sm:$0xf] }
  0x2c   : > { %v619_v25 = vor.u32 %v618_v20, %v615_v17  ;;  %v606_v28 = vrot.slane %v605_v23, 4  ;;  %v624_v30 = vrot.slane %v622_v21, 5  ;;  %v686_v35 = vshll.u32 %v591_v24, 16  ;;  %v2316_v0 = vld [vmem:[%s2619_s25 + $0x7c] sm:$0xf0]  ;;  %v2348_v16 = vld [vmem:[%s3052_s2 + $0x88] sm:$0xff] }
  0x2d   : > { %2009 = vmatmul.msk.bf16.vlgmr.msrb.gmra.mxu0 %vm464_vm0, %v1988_v5  ;;  %v697_v40 = vshrl.u32 %v593_v26, 16  ;;  %v700_v41 = vshll.u32 %v593_v26, 16  ;;  %v719_v45 = vunpack.c.l.b16 %v667_v27  ;;  %v720_v46 = vunpack.c.l.b16 %v681_v32  ;;  %1154 = vmatpush.bf16.msrb.mxu1 %v2333_v42  ;;  %v1999_v1 = vld [vmem:[%s2619_s25 + $0x30] sm:$0xf]  ;;  %v2310_v2 = vld [vmem:[%s2619_s25 + $0x34] sm:$0xf0] }
  0x2e   : > { %v620_v33 = vrot.slane %v619_v25, 4  ;;  %947 = vmatpush.bf16.msrb.mxu0 %v2332_v22  ;;  %v611_v47 = vsel %vm2642_vm3, %v606_v28, %v610_v29  ;;  %v685_v50 = vrot.slane %v683_v34, 4  ;;  %v688_v51 = vrot.slane %v686_v35, 5  ;;  %1249 = vmatpush.bf16.msrb.mxu2 %v2339_v43  ;;  %v2110_v11 = vld [vmem:[%s2619_s25 + $0x94] sm:$0x1] }
  0x2f   : > { %1983 = vmatmul.msk.bf16.gmra.mxu3 %vm464_vm0, %v1968_v61  ;;  %2011 = vmatmul.msk.bf16.gmra.mxu1 %vm464_vm0, %v1996_v6  ;;  %v995_v52 = vshrl.u32 %v2109_v44, 16  ;;  %v998_v53 = vshll.u32 %v2109_v44, 16  ;;  %v699_v54 = vrot.slane %v697_v40, 4  ;;  %v702_v55 = vrot.slane %v700_v41, 5  ;;  %v594_v61 = vld [vmem:[%s2619_s25 + $0x3c] sm:$0x1] }
  0x30   : > { %v625_v48 = vsel %vm2642_vm3, %v620_v33, %v624_v30  ;;  %v1009_v56 = vshrl.u32 %v2111_v49, 16  ;;  %v1012_v57 = vshll.u32 %v2111_v49, 16  ;;  %v715_v58 = vunpack.c.l.b16 %v611_v47  ;;  %v2112_v12 = vld [vmem:[%s2619_s25 + $0x9c] sm:$0x1]  ;;  %v2113_v25 = vld [vmem:[%s2619_s25 + $0xa0] sm:$0xf] }
  0x31   : > { %v716_v59 = vunpack.c.l.b16 %v625_v48  ;;  %v725_v62 = vpack.c.b16 %v720_v46, %v719_v45  ;;  %v997_v3 = vrot.slane %v995_v52, 4  ;;  %v1000_v4 = vrot.slane %v998_v53, 5  ;;  %v2115_v26 = vld [vmem:[%s2619_s25 + $0xa8] sm:$0xf]  ;;  %v2083_v42 = vld [vmem:[%s2619_s25 + $0xd8] sm:$0xf] }
  0x32   : > { %948 = vmatpush.bf16.msrb.mxu0 %v2331_v36  ;;  %v1011_v5 = vrot.slane %v1009_v56, 4  ;;  %v1014_v6 = vrot.slane %v1012_v57, 5  ;;  %v689_v7 = vor.u32 %v688_v51, %v685_v50  ;;  %v692_v8 = vshll.u32 %v592_v60, 16  ;;  %v2327_v43 = vld [vmem:[%s2619_s25 + $0xdc] sm:$0xf0] }
  0x33   : > { %v703_v9 = vor.u32 %v702_v55, %v699_v54  ;;  %v706_v10 = vshll.u32 %v594_v61, 16  ;;  %v723_v13 = vpack.c.b16 %v716_v59, %v715_v58  ;;  %v1972_v14 = vor.u32 %v2316_v0, %v1971_v63  ;;  %v2114_v50 = vld [vmem:[%s2619_s25 + $0xa4] sm:$0x1]  ;;  %v2116_v51 = vld [vmem:[%s2619_s25 + $0xac] sm:$0x1] }
  0x34   : > { %v2000_v15 = vor.u32 %v2310_v2, %v1999_v1  ;;  %v1001_v17 = vor.u32 %v1000_v4, %v997_v3  ;;  %v1004_v18 = vshll.u32 %v2110_v11, 16  ;;  %v1015_v19 = vor.u32 %v1014_v6, %v1011_v5  ;;  %v2043_v53 = vld [vmem:[%s2619_s25 + $0x90] sm:$0xf]  ;;  %v2321_v54 = vld [vmem:[%s2619_s25 + $0x94] sm:$0xf0]  ;;  %v2347_v3 = vld [vmem:[%s3052_s2 + $0x80] sm:$0xff] }
  0x35   : > { %v1018_v20 = vshll.u32 %v2112_v12, 16  ;;  %v690_v21 = vrot.slane %v689_v7, 4  ;;  %v694_v22 = vrot.slane %v692_v8, 5  ;;  %v704_v23 = vrot.slane %v703_v9, 4  ;;  %v2345_v2 = vld [vmem:[%s3052_s2 + $0x70] sm:$0xff] }
  0x36   : > { %v708_v24 = vrot.slane %v706_v10, 5  ;;  %v1002_v27 = vrot.slane %v1001_v17, 4  ;;  %v1006_v28 = vrot.slane %v1004_v18, 5  ;;  %v1016_v29 = vrot.slane %v1015_v19, 4  ;;  %v2117_v4 = vld [vmem:[%s2619_s25 + $0xb0] sm:$0xf]  ;;  %1344 = vmatpush.bf16.msra.mxu3 %v2345_v2 }
  0x37   : > { %v1020_v30 = vrot.slane %v1018_v20, 5  ;;  %v695_v31 = vsel %vm2642_vm3, %v690_v21, %v694_v22  ;;  %v1023_v33 = vshrl.u32 %v2113_v25, 16  ;;  %v1026_v34 = vshll.u32 %v2113_v25, 16  ;;  %v2119_v5 = vld [vmem:[%s2619_s25 + $0xb8] sm:$0xf] }
  0x38   : > { %v709_v32 = vsel %vm2642_vm3, %v704_v23, %v708_v24  ;;  %v1037_v35 = vshrl.u32 %v2115_v26, 16  ;;  %v1040_v36 = vshll.u32 %v2115_v26, 16  ;;  %v721_v38 = vunpack.c.l.b16 %v695_v31  ;;  %v2155_v12 = vld [vmem:[%s2619_s25 + $0x8] sm:$0xf]  ;;  %v2328_v19 = vld [vmem:[%s2619_s25 + $0xec] sm:$0xf0] }
  0x39   : > { %v722_v39 = vunpack.c.l.b16 %v709_v32  ;;  %v1007_v40 = vsel %vm2642_vm3, %v1002_v27, %v1006_v28  ;;  %v1021_v41 = vsel %vm2642_vm3, %v1016_v29, %v1020_v30  ;;  %v1025_v44 = vrot.slane %v1023_v33, 4  ;;  %v2118_v25 = vld [vmem:[%s2619_s25 + $0xb4] sm:$0x1]  ;;  %v2120_v26 = vld [vmem:[%s2619_s25 + $0xbc] sm:$0x1] }
  0x3a   : > { %v1028_v45 = vrot.slane %v1026_v34, 5  ;;  %v1039_v46 = vrot.slane %v1037_v35, 4  ;;  %v1042_v47 = vrot.slane %v1040_v36, 5  ;;  %v1111_v48 = vunpack.c.l.b16 %v1007_v40  ;;  %v2123_v40 = vld [vmem:[%s2619_s25 + $0xc8] sm:$0xf] }
  0x3b   : > { %2027 = vmatmul.msk.bf16.gmra.mxu2 %vm464_vm0, %v725_v62  ;;  %v1112_v49 = vunpack.c.l.b16 %v1021_v41  ;;  %v726_v52 = vpack.c.b16 %v722_v39, %v721_v38  ;;  %v2084_v55 = vor.u32 %v2327_v43, %v2083_v42  ;;  %v1032_v57 = vshll.u32 %v2114_v50, 16  ;;  %v2121_v39 = vld [vmem:[%s2619_s25 + $0xc0] sm:$0xf]  ;;  %v2159_v41 = vld [vmem:[%s2619_s25 + $0x18] sm:$0xf] }
  0x3c   : > { %v1029_v56 = vor.u32 %v1028_v45, %v1025_v44  ;;  %v1043_v58 = vor.u32 %v1042_v47, %v1039_v46  ;;  %v1046_v59 = vshll.u32 %v2116_v51, 16  ;;  %v2044_v60 = vor.u32 %v2321_v54, %v2043_v53  ;;  %v2336_v44 = vld [vmem:[%s2619_s25 + $0x1c] sm:$0xf0]  ;;  %v2051_v50 = vld [vmem:[%s2619_s25 + $0xb0] sm:$0xf] }
  0x3d   : > { %2025 = vmatmul.msk.bf16.vlgmr.msra.gmra.mxu0 %vm464_vm0, %v723_v13  ;;  %v1119_v61 = vpack.c.b16 %v1112_v49, %v1111_v48  ;;  %v1034_v63 = vrot.slane %v1032_v57, 5  ;;  %v1051_v8 = vshrl.u32 %v2117_v4, 16  ;;  %v1054_v9 = vshll.u32 %v2117_v4, 16  ;;  %v2335_v13 = vld [vmem:[%s2619_s25 + $0xc] sm:$0xf0] }
  0x3e   : > { %1549 = vmatpush.bf16.msra.mxu0 %v2348_v16  ;;  %v1030_v62 = vrot.slane %v1029_v56, 4  ;;  %v1044_v0 = vrot.slane %v1043_v58, 4  ;;  %v1048_v1 = vrot.slane %v1046_v59, 5  ;;  %v1065_v10 = vshrl.u32 %v2119_v5, 16  ;;  %v2087_v16 = vld [vmem:[%s2619_s25 + $0xe8] sm:$0xf] }
  0x3f   : > { %1984 = vmatmul.msk.bf16.gmra.mxu3 %vm464_vm0, %v1972_v14  ;;  %2012 = vmatmul.msk.bf16.gmra.mxu1 %vm464_vm0, %v2000_v15  ;;  %v1068_v11 = vshll.u32 %v2119_v5, 16  ;;  %v2047_v14 = vld [vmem:[%s2619_s25 + $0xa0] sm:$0xf]  ;;  %v2322_v15 = vld [vmem:[%s2619_s25 + $0xa4] sm:$0xf0]  ;;  %v1053_v20 = vrot.slane %v1051_v8, 4  ;;  %v2156_v24 = vor.u32 %v2335_v13, %v2155_v12  ;;  %v2088_v28 = vor.u32 %v2328_v19, %v2087_v16 }
  0x40   : > { %v1035_v6 = vsel %vm2642_vm3, %v1030_v62, %v1034_v63  ;;  %v1049_v7 = vsel %vm2642_vm3, %v1044_v0, %v1048_v1  ;;  %v1056_v21 = vrot.slane %v1054_v9, 5  ;;  %v1067_v22 = vrot.slane %v1065_v10, 4  ;;  %v2091_v51 = vld [vmem:[%s2619_s25 + $0xf8] sm:$0xf]  ;;  %v2221_v5 = vld [vmem:[%s2619_s25 + $0x8] sm:$0xf] }
  0x41   : > { %v1113_v17 = vunpack.c.l.b16 %v1035_v6  ;;  %v1114_v18 = vunpack.c.l.b16 %v1049_v7  ;;  %v1070_v23 = vrot.slane %v1068_v11, 5  ;;  %v2048_v27 = vor.u32 %v2322_v15, %v2047_v14  ;;  %v2223_v10 = vld [vmem:[%s2619_s25 + $0x10] sm:$0xf]  ;;  %v2055_v19 = vld [vmem:[%s2619_s25 + $0xc0] sm:$0xf] }
  0x42   : > { %1550 = vmatpush.bf16.msra.mxu0 %v2347_v3  ;;  %v1057_v30 = vor.u32 %v1056_v21, %v1053_v20  ;;  %v1060_v31 = vshll.u32 %v2118_v25, 16  ;;  %v1074_v33 = vshll.u32 %v2120_v26, 16  ;;  %v1079_v45 = vshrl.u32 %v2121_v39, 16  ;;  %v2324_v20 = vld [vmem:[%s2619_s25 + $0xc4] sm:$0xf0] }
  0x43   : > { %v1120_v29 = vpack.c.b16 %v1114_v18, %v1113_v17  ;;  %v1071_v32 = vor.u32 %v1070_v23, %v1067_v22  ;;  %v1082_v46 = vshll.u32 %v2121_v39, 16  ;;  %v1093_v47 = vshrl.u32 %v2123_v40, 16  ;;  %v2163_v17 = vld [vmem:[%s2619_s25 + $0x28] sm:$0xf]  ;;  %v2337_v18 = vld [vmem:[%s2619_s25 + $0x2c] sm:$0xf0] }
  0x44   : > { %v1058_v34 = vrot.slane %v1057_v30, 4  ;;  %v1062_v35 = vrot.slane %v1060_v31, 5  ;;  %v1076_v38 = vrot.slane %v1074_v33, 5  ;;  %v1096_v48 = vshll.u32 %v2123_v40, 16  ;;  %v2095_v23 = vld [vmem:[%s2619_s25 + $0x108] sm:$0xf] }
  0x45   : > { %v1072_v36 = vrot.slane %v1071_v32, 4  ;;  %v2160_v49 = vor.u32 %v2336_v44, %v2159_v41  ;;  %v1081_v56 = vrot.slane %v1079_v45, 4  ;;  %v1084_v57 = vrot.slane %v1082_v46, 5  ;;  %v2222_v30 = vld [vmem:[%s2619_s25 + $0xc] sm:$0x1] }
  0x46   : > { %v1063_v42 = vsel %vm2642_vm3, %v1058_v34, %v1062_v35  ;;  %v1095_v58 = vrot.slane %v1093_v47, 4  ;;  %v1098_v59 = vrot.slane %v1096_v48, 5  ;;  %v1391_v11 = vshrl.u32 %v2221_v5, 16  ;;  %v2224_v31 = vld [vmem:[%s2619_s25 + $0x14] sm:$0x1] }
  0x47   : > { %v1077_v43 = vsel %vm2642_vm3, %v1072_v36, %v1076_v38  ;;  %v1115_v53 = vunpack.c.l.b16 %v1063_v42  ;;  %v1085_v1 = vor.u32 %v1084_v57, %v1081_v56  ;;  %v1394_v12 = vshll.u32 %v2221_v5, 16  ;;  %v2225_v40 = vld [vmem:[%s2619_s25 + $0x18] sm:$0xf]  ;;  %v2227_v41 = vld [vmem:[%s2619_s25 + $0x20] sm:$0xf] }
  0x48   : > { %v1116_v54 = vunpack.c.l.b16 %v1077_v43  ;;  %v1099_v3 = vor.u32 %v1098_v59, %v1095_v58  ;;  %v1405_v13 = vshrl.u32 %v2223_v10, 16  ;;  %v1408_v14 = vshll.u32 %v2223_v10, 16 }
  0x49   : > { %v1086_v6 = vrot.slane %v1085_v1, 4  ;;  %v1393_v21 = vrot.slane %v1391_v11, 4  ;;  %v1396_v22 = vrot.slane %v1394_v12, 5  ;;  %v2056_v32 = vor.u32 %v2324_v20, %v2055_v19  ;;  %v2229_v11 = vld [vmem:[%s2619_s25 + $0x28] sm:$0xf] }
  0x4a   : > { %v1121_v0 = vpack.c.b16 %v1116_v54, %v1115_v53  ;;  %v1100_v8 = vrot.slane %v1099_v3, 4  ;;  %v1400_v36 = vshll.u32 %v2222_v30, 16  ;;  %v1414_v39 = vshll.u32 %v2224_v31, 16  ;;  %v2338_v53 = vld [vmem:[%s2619_s25 + $0x3c] sm:$0xf0] }
  0x4b   : > { %2028 = vmatmul.msk.bf16.gmra.mxu2 %vm464_vm0, %v726_v52  ;;  %v2329_v52 = vld [vmem:[%s2619_s25 + $0xfc] sm:$0xf0]  ;;  %v1397_v34 = vor.u32 %v1396_v22, %v1393_v21  ;;  %v1419_v46 = vshrl.u32 %v2225_v40, 16  ;;  %v1422_v47 = vshll.u32 %v2225_v40, 16  ;;  %v1433_v48 = vshrl.u32 %v2227_v41, 16 }
  0x4c   : > { %v2092_v62 = vor.u32 %v2329_v52, %v2091_v51  ;;  %v1402_v43 = vrot.slane %v1400_v36, 5  ;;  %v1416_v45 = vrot.slane %v1414_v39, 5  ;;  %v2167_v52 = vld [vmem:[%s2619_s25 + $0x38] sm:$0xf]  ;;  %v2231_v12 = vld [vmem:[%s2619_s25 + $0x30] sm:$0xf] }
  0x4d   : > { %2105 = vmatmul.msk.bf16.vlgmr.msrb.gmra.mxu0 %vm464_vm0, %v2084_v55  ;;  %v2323_v55 = vld [vmem:[%s2619_s25 + $0xb4] sm:$0xf0]  ;;  %v1398_v42 = vrot.slane %v1397_v34, 4  ;;  %v1421_v54 = vrot.slane %v1419_v46, 4  ;;  %v1435_v56 = vrot.slane %v1433_v48, 4 }
  0x4e   : > { %v2052_v63 = vor.u32 %v2323_v55, %v2051_v50  ;;  %v1424_v55 = vrot.slane %v1422_v47, 5 }
  0x4f   : > { %2065 = vmatmul.msk.bf16.vlgmr.msrb.gmra.mxu3 %vm464_vm0, %v2044_v60  ;;  %2137 = vmatmul.msk.bf16.vlgmr.msrb.gmra.mxu1 %vm464_vm0, %v1119_v61  ;;  %v2122_v60 = vld [vmem:[%s2619_s25 + $0xc4] sm:$0x1]  ;;  %v2124_v61 = vld [vmem:[%s2619_s25 + $0xcc] sm:$0x1]  ;;  %v1403_v50 = vsel %vm2642_vm3, %v1398_v42, %v1402_v43  ;;  %v2233_v42 = vld [vmem:[%s2619_s25 + $0x38] sm:$0xf] }
  0x50   : > { %v1088_v2 = vshll.u32 %v2122_v60, 16  ;;  %v1102_v4 = vshll.u32 %v2124_v61, 16  ;;  %v1507_v58 = vunpack.c.l.b16 %v1403_v50  ;;  %v2226_v60 = vld [vmem:[%s2619_s25 + $0x1c] sm:$0x1]  ;;  %v2228_v61 = vld [vmem:[%s2619_s25 + $0x24] sm:$0x1]  ;;  %v1425_v1 = vor.u32 %v1424_v55, %v1421_v54 }
  0x51   : > { %v2235_v43 = vld [vmem:[%s2619_s25 + $0x40] sm:$0xf]  ;;  %v1475_v47 = vshrl.u32 %v2233_v42, 16  ;;  %v1478_v50 = vshll.u32 %v2233_v42, 16  ;;  %v2203_v54 = vld [vmem:[%s2619_s25 + $0x70] sm:$0xf] }
  0x52   : > { %v1090_v7 = vrot.slane %v1088_v2, 5  ;;  %v1104_v9 = vrot.slane %v1102_v4, 5  ;;  %v1428_v2 = vshll.u32 %v2226_v60, 16  ;;  %v1442_v4 = vshll.u32 %v2228_v61, 16  ;;  %v2350_v42 = vld [vmem:[%s3055_s5 + $0x8] sm:$0xff] }
  0x53   : > { %1650 = vmatpush.bf16.msra.mxu1 %v2350_v42  ;;  %v2913_v42 = vld [vmem:[%s3054_s4] ss:$0 sm:$0xff] }
  0x54   : > { %v1091_v15 = vsel %vm2642_vm3, %v1086_v6, %v1090_v7  ;;  %v1105_v16 = vsel %vm2642_vm3, %v1100_v8, %v1104_v9  ;;  %v1426_v7 = vrot.slane %v1425_v1, 4  ;;  %v1430_v8 = vrot.slane %v1428_v2, 5 }
  0x55   : > { %v1117_v25 = vunpack.c.l.b16 %v1091_v15  ;;  %v1118_v26 = vunpack.c.l.b16 %v1105_v16  ;;  %v1444_v10 = vrot.slane %v1442_v4, 5  ;;  %v1447_v15 = vshrl.u32 %v2229_v11, 16 }
  0x56   : > { %v1450_v16 = vshll.u32 %v2229_v11, 16 }
  0x57   : > { %v1122_v35 = vpack.c.b16 %v1118_v26, %v1117_v25  ;;  %v1449_v21 = vrot.slane %v1447_v15, 4  ;;  %v2230_v25 = vld [vmem:[%s2619_s25 + $0x2c] sm:$0x1]  ;;  %v2232_v26 = vld [vmem:[%s2619_s25 + $0x34] sm:$0x1] }
  0x58   : > { %v1452_v22 = vrot.slane %v1450_v16, 5  ;;  %v1456_v31 = vshll.u32 %v2230_v25, 16 }
  0x5a   : > { %v1453_v30 = vor.u32 %v1452_v22, %v1449_v21  ;;  %v1458_v39 = vrot.slane %v1456_v31, 5 }
  0x5b   : > { %2177 = vmatmul.msk.bf16.vlgmr.msrb.gmra.mxu2 %vm464_vm0, %v2156_v24  ;;  %v2330_v24 = vld [vmem:[%s2619_s25 + $0x10c] sm:$0xf0] }
  0x5c   : > { %v2096_v33 = vor.u32 %v2330_v24, %v2095_v23 }
  0x5d   : > { %2106 = vmatmul.msk.bf16.gmra.mxu0 %vm464_vm0, %v2088_v28  ;;  %v1410_v28 = vrot.slane %v1408_v14, 5 }
  0x5f   : > { %2066 = vmatmul.msk.bf16.gmra.mxu3 %vm464_vm0, %v2048_v27  ;;  %2138 = vmatmul.msk.bf16.gmra.mxu1 %vm464_vm0, %v1120_v29  ;;  %v1407_v27 = vrot.slane %v1405_v13, 4  ;;  %v2164_v29 = vor.u32 %v2337_v18, %v2163_v17  ;;  %v1431_v13 = vsel %vm2642_vm3, %v1426_v7, %v1430_v8  ;;  %v1461_v17 = vshrl.u32 %v2231_v12, 16 }
  0x60   : > { %v1464_v18 = vshll.u32 %v2231_v12, 16  ;;  %v1509_v19 = vunpack.c.l.b16 %v1431_v13 }
  0x61   : > { %v1411_v38 = vor.u32 %v1410_v28, %v1407_v27  ;;  %v1463_v23 = vrot.slane %v1461_v17, 4  ;;  %v2199_v27 = vld [vmem:[%s2619_s25 + $0x60] sm:$0xf]  ;;  %v2342_v28 = vld [vmem:[%s2619_s25 + $0x64] sm:$0xf0] }
  0x62   : > { %v1466_v24 = vrot.slane %v1464_v18, 5 }
  0x63   : > { %v1412_v44 = vrot.slane %v1411_v38, 4  ;;  %v1454_v38 = vrot.slane %v1453_v30, 4 }
  0x65   : > { %v1417_v51 = vsel %vm2642_vm3, %v1412_v44, %v1416_v45  ;;  %v1459_v45 = vsel %vm2642_vm3, %v1454_v38, %v1458_v39 }
  0x66   : > { %v1508_v59 = vunpack.c.l.b16 %v1417_v51  ;;  %v1489_v51 = vshrl.u32 %v2235_v43, 16  ;;  %v1511_v55 = vunpack.c.l.b16 %v1459_v45 }
  0x68   : > { %v1515_v5 = vpack.c.b16 %v1508_v59, %v1507_v58  ;;  %v1477_v58 = vrot.slane %v1475_v47, 4  ;;  %v1480_v59 = vrot.slane %v1478_v50, 5  ;;  %v1491_v60 = vrot.slane %v1489_v51, 4  ;;  %v2357_v47 = vld [vmem:[%s3058_s8 + $0x10] sm:$0xff] }
  0x6a   : > { %v1481_v4 = vor.u32 %v1480_v59, %v1477_v58 }
  0x6b   : > { %2178 = vmatmul.msk.bf16.gmra.mxu2 %vm464_vm0, %v2160_v49  ;;  %v1436_v49 = vshll.u32 %v2227_v41, 16 }
  0x6c   : > { %v1482_v11 = vrot.slane %v1481_v4, 4 }
  0x6d   : > { %2107 = vmatmul.msk.bf16.gmra.mxu0 %vm464_vm0, %v2092_v62  ;;  %v1438_v57 = vrot.slane %v1436_v49, 5  ;;  %v2168_v62 = vor.u32 %v2338_v53, %v2167_v52  ;;  %v1492_v52 = vshll.u32 %v2235_v43, 16 }
  0x6f   : > { %2067 = vmatmul.msk.bf16.gmra.mxu3 %vm464_vm0, %v2052_v63  ;;  %2139 = vmatmul.msk.bf16.gmra.mxu1 %vm464_vm0, %v1121_v0  ;;  %v2195_v63 = vld [vmem:[%s2619_s25 + $0x50] sm:$0xf]  ;;  %v2341_v0 = vld [vmem:[%s2619_s25 + $0x54] sm:$0xf0]  ;;  %v1439_v3 = vor.u32 %v1438_v57, %v1435_v56  ;;  %v1494_v61 = vrot.slane %v1492_v52, 5 }
  0x70   : > { %v2196_v6 = vor.u32 %v2341_v0, %v2195_v63  ;;  %v2343_v57 = vld [vmem:[%s2619_s25 + $0x74] sm:$0xf0]  ;;  %v2236_v63 = vld [vmem:[%s2619_s25 + $0x44] sm:$0x1] }
  0x71   : > { %v1440_v9 = vrot.slane %v1439_v3, 4  ;;  %v2204_v1 = vor.u32 %v2343_v57, %v2203_v54  ;;  %v1498_v7 = vshll.u32 %v2236_v63, 16  ;;  %v2355_v63 = vld [vmem:[%s3058_s8] sm:$0xff] }
  0x73   : > { %v1445_v14 = vsel %vm2642_vm3, %v1440_v9, %v1444_v10 }
  0x74   : > { %v1510_v20 = vunpack.c.l.b16 %v1445_v14  ;;  %v1500_v14 = vrot.slane %v1498_v7, 5  ;;  %v2351_v7 = vld [vmem:[%s2887_s13] sm:$0xff] }
  0x7b   : > { %2179 = vmatmul.msk.bf16.gmra.mxu2 %vm464_vm0, %v2164_v29  ;;  %v1516_v29 = vpack.c.b16 %v1510_v20, %v1509_v19 }
  0x7d   : > { %2108 = vmatmul.msk.bf16.gmra.mxu0 %vm464_vm0, %v2096_v33  ;;  %v1470_v33 = vshll.u32 %v2232_v26, 16  ;;  %v2207_v26 = vld [vmem:[%s2619_s25 + $0x80] sm:$0xf] }
  0x7f   : > { %2068 = vmatmul.msk.bf16.gmra.mxu3 %vm464_vm0, %v2056_v32  ;;  %2140 = vmatmul.msk.bf16.gmra.mxu1 %vm464_vm0, %v1122_v35  ;;  %v1467_v32 = vor.u32 %v1466_v24, %v1463_v23  ;;  %v2200_v35 = vor.u32 %v2342_v28, %v2199_v27  ;;  %v1472_v41 = vrot.slane %v1470_v33, 5  ;;  %v2344_v27 = vld [vmem:[%s2619_s25 + $0x84] sm:$0xf0] }
  0x80   : > { %v2208_v31 = vor.u32 %v2344_v27, %v2207_v26 }
  0x81   : > { %v1468_v40 = vrot.slane %v1467_v32, 4 }
  0x83   : > { %v1473_v46 = vsel %vm2642_vm3, %v1468_v40, %v1472_v41 }
  0x84   : > { %v1512_v56 = vunpack.c.l.b16 %v1473_v46 }
  0x86   : > { %v1517_v2 = vpack.c.b16 %v1512_v56, %v1511_v55  ;;  %v2356_v55 = vld [vmem:[%s3058_s8 + $0x8] sm:$0xff] }
  0x8b   : > { %2180 = vmatmul.msk.bf16.gmra.mxu2 %vm464_vm0, %v2168_v62  ;;  %v2234_v62 = vld [vmem:[%s2619_s25 + $0x3c] sm:$0x1]  ;;  %s2359_s25 = sshll.u32 %s2561_s21, 6  ;;  %s1848_s21 = scalar_lea.sflag [#allocation3], %s392_s15 }
  0x8c   : > { %s1859_s12 = scalar_lea.hbm %s3061_s11, %s2359_s25 }
  0x8d   : > { %2249 = vmatmul.msk.bf16.vlgmr.msra.gmra.mxu0 %vm464_vm0, %v1515_v5  ;;  %v1484_v5 = vshll.u32 %v2234_v62, 16  ;;  %s1862_s24 = sshll.u32 %s1859_s12, 4  ;;  %s1863_s24 = int_to_ptr.hbm [resolvable:$true] %s1862_s24 }
  0x8e   : > { %s2428_s14 = sshra.s32 %s1863_s24, 4  ;;  %s2429_s14 = int_to_ptr.hbm [resolvable:$true] %s2428_s14 }
  0x8f   : > { %2217 = vmatmul.msk.bf16.vlgmr.msra.gmra.mxu3 %vm464_vm0, %v2196_v6  ;;  %v1495_v6 = vor.u32 %v1494_v61, %v1491_v60  ;;  %v1486_v12 = vrot.slane %v1484_v5, 5  ;;  %v2349_v60 = vld [vmem:[%s3055_s5] sm:$0xff]  ;;  %s2430_s16 = scalar_lea.hbm %s2429_s14, 64  ;;  %p2435_p0 = scmp.lt.s32.totalorder %s2429_s14, %s3061_s11 }
  0x90   : > { %1651 = vmatpush.bf16.msra.mxu1 %v2349_v60  ;;  %p2431_p11 = scmp.ne.s32.totalorder %s2429_s14, %s2430_s16  ;;  %p2436_p1 = scmp.lt.s32.totalorder %s2434_s30, %s2430_s16 }
  0x91   : > { %v1496_v13 = vrot.slane %v1495_v6, 4  ;;  %v1487_v19 = vsel %vm2642_vm3, %v1482_v11, %v1486_v12 }
  0x92   : > { %v1513_v23 = vunpack.c.l.b16 %v1487_v19  ;;  %p2432_p12 = pnand %p2431_p11, %p2578_p5  ;;  %p2437_p2 = por %p2436_p1, %p2435_p0 }
  0x93   : > { %v1501_v20 = vsel %vm2642_vm3, %v1496_v13, %v1500_v14 }
  0x94   : > { %v1514_v24 = vunpack.c.l.b16 %v1501_v20  ;;  %p2433_p13 = pneg %p2432_p12 }
  0x96   : > { %p2438_p3 = pnand %p2437_p2, %p2433_p13 }
  0x9a   : > { %v486_v34 = vpop.f32.mrf.mxu0 }
  0x9c   : > { %v564_v36 = vpop.f32.mrf.mxu1 }
  0x9d   : > { %2250 = vmatmul.msk.bf16.gmra.mxu0 %vm464_vm0, %v1516_v29  ;;  %v1518_v29 = vpack.c.b16 %v1514_v24, %v1513_v23 }
  0x9f   : > { %2218 = vmatmul.msk.bf16.gmra.mxu3 %vm464_vm0, %v2200_v35  ;;  %v2358_v35 = vld [vmem:[%s3058_s8 + $0x18] sm:$0xff] }
  0xa0   : > { %1774 = vmatpush.bf16.msra.mxu2 %v2358_v35  ;;  %v2353_v35 = vld [vmem:[%s2887_s13 + $0x10] sm:$0xff] }
  0xa2   : > { %v491_v44 = vpop.f32.mrf.mxu3  ;;  %v488_v49 = vpop.f32.mrf.mxu0 }
  0xa3   : > { %v565_v48 = vadd.f32 %v564_v36, %v491_v44 }
  0xa4   : > { %v2827_v53 = vpop.f32.mrf.mxu1  ;;  %1775 = vmatpush.bf16.msra.mxu2 %v2357_v47 }
  0xa8   : > { %1776 = vmatpush.bf16.msra.mxu2 %v2356_v55 }
  0xaa   : > { %v2833_v0 = vpop.f32.mrf.mxu3  ;;  %v559_v3 = vpop.f32.mrf.mxu0 }
  0xab   : > { %v560_v8 = vadd.f32 %v559_v3, %v486_v34 }
  0xac   : > { %v569_v9 = vpop.f32.mrf.mxu1  ;;  %1777 = vmatpush.bf16.msra.mxu2 %v2355_v63 }
  0xad   : > { %2251 = vmatmul.msk.bf16.gmra.mxu0 %vm464_vm0, %v1517_v2 }
  0xae   : > { %v765_v10 = vpop.f32.mrf.mxu2 }
  0xaf   : > { %2219 = vmatmul.msk.bf16.gmra.mxu3 %vm464_vm0, %v2204_v1  ;;  %v782_v15 = vadd.f32 %v765_v10, %v565_v48  ;;  %2297 = vmatmul.msk.bf16.vlgmr.msra.gmra.mxu2 %vm1757_vm4, %v2351_v7 }
  0xb2   : > { %v496_v16 = vpop.f32.mrf.mxu3  ;;  %v561_v18 = vpop.f32.mrf.mxu0 }
  0xb3   : > { %v570_v17 = vadd.f32 %v569_v9, %v496_v16  ;;  %v562_v21 = vadd.f32 %v561_v18, %v488_v49  ;;  %v2352_v16 = vld [vmem:[%s2887_s13 + $0x8] sm:$0xff] }
  0xb4   : > { %v2841_v22 = vpop.f32.mrf.mxu1 }
  0xb6   : > { %v2843_v25 = vpop.f32.mrf.mxu2 }
  0xba   : > { %v2847_v28 = vpop.f32.mrf.mxu3  ;;  %v760_v30 = vpop.f32.mrf.mxu0 }
  0xbb   : > { %v780_v32 = vadd.f32 %v760_v30, %v560_v8 }
  0xbc   : > { %v574_v34 = vpop.f32.mrf.mxu1 }
  0xbd   : > { %2252 = vmatmul.msk.bf16.gmra.mxu0 %vm464_vm0, %v1518_v29 }
  0xbe   : > { %v770_v33 = vpop.f32.mrf.mxu2 }
  0xbf   : > { %2220 = vmatmul.msk.bf16.gmra.mxu3 %vm464_vm0, %v2208_v31  ;;  %v784_v37 = vadd.f32 %v770_v33, %v570_v17  ;;  %2298 = vmatmul.msk.bf16.gmra.mxu2 %vm1757_vm4, %v2352_v16 }
  0xc2   : > { %v501_v36 = vpop.f32.mrf.mxu3  ;;  %v762_v39 = vpop.f32.mrf.mxu0 }
  0xc3   : > { %v575_v38 = vadd.f32 %v574_v34, %v501_v36  ;;  %v781_v40 = vadd.f32 %v762_v39, %v562_v21  ;;  %v2904_v34 = vld [vmem:[%s3053_s3] ss:$0 sm:$0xff]  ;;  %v567_v39 = vadd.f32 %v2827_v53, %v2833_v0 }
  0xc4   : > { %v2880_v5 = vpop.f32.mrf.mxu1 }
  0xc5   : > { %v783_v47 = vadd.f32 %v2843_v25, %v567_v39 }
  0xc6   : > { %v2854_v41 = vpop.f32.mrf.mxu2 }
  0xca   : > { %v2859_v43 = vpop.f32.mrf.mxu3  ;;  %v950_v44 = vpop.f32.mrf.mxu0 }
  0xcc   : > { %v1156_v10 = vpop.f32.mrf.mxu1 }
  0xce   : > { %v775_v45 = vpop.f32.mrf.mxu2 }
  0xcf   : > { %v786_v46 = vadd.f32 %v775_v45, %v575_v38  ;;  %2299 = vmatmul.msk.bf16.gmra.mxu2 %vm1757_vm4, %v2353_v35 }
  0xd2   : > { %v855_v48 = vpop.f32.mrf.mxu3  ;;  %v952_v50 = vpop.f32.mrf.mxu0 }
  0xd3   : > { %v875_v49 = vadd.f32 %v855_v48, %v780_v32 }
  0xd4   : > { %v1158_v17 = vpop.f32.mrf.mxu1 }
  0xd5   : > { %v970_v51 = vadd.f32 %v950_v44, %v875_v49 }
  0xd6   : > { %v2882_v6 = vpop.f32.mrf.mxu2 }
  0xd7   : > { %v1176_v21 = vadd.f32 %v1156_v10, %v970_v51 }
  0xda   : > { %v857_v52 = vpop.f32.mrf.mxu3  ;;  %v955_v54 = vpop.f32.mrf.mxu0 }
  0xdb   : > { %v876_v23 = vadd.f32 %v857_v52, %v781_v40 }
  0xdc   : > { %v1161_v26 = vpop.f32.mrf.mxu1 }
  0xdd   : > { %v971_v29 = vadd.f32 %v952_v50, %v876_v23 }
  0xde   : > { %v1251_v11 = vpop.f32.mrf.mxu2 }
  0xdf   : > { %v1271_v24 = vadd.f32 %v1251_v11, %v1176_v21  ;;  %v1177_v33 = vadd.f32 %v1158_v17, %v971_v29  ;;  %v572_v11 = vadd.f32 %v2841_v22, %v2847_v28 }
  0xe2   : > { %v860_v56 = vpop.f32.mrf.mxu3  ;;  %v2867_v58 = vpop.f32.mrf.mxu0 }
  0xe3   : > { %v877_v57 = vadd.f32 %v860_v56, %v782_v15 }
  0xe5   : > { %v972_v59 = vadd.f32 %v955_v54, %v877_v57 }
  0xe6   : > { %v1253_v18 = vpop.f32.mrf.mxu2 }
  0xe7   : > { %v1272_v36 = vadd.f32 %v1253_v18, %v1177_v33  ;;  %v1178_v50 = vadd.f32 %v1161_v26, %v972_v59 }
  0xea   : > { %v862_v61 = vpop.f32.mrf.mxu3  ;;  %v960_v62 = vpop.f32.mrf.mxu0 }
  0xeb   : > { %v878_v51 = vadd.f32 %v862_v61, %v783_v47  ;;  %v2354_v61 = vld [vmem:[%s2887_s13 + $0x18] sm:$0xff]  ;;  %s1860_s13 = sshll.u32 %s2979_s22, 4  ;;  %s1861_s13 = int_to_ptr.vmem [resolvable:$true] %s1860_s13 }
  0xec   : > { %2300 = vmatmul.msk.bf16.gmra.mxu2 %vm1757_vm4, %v2354_v61 }
  0xed   : > { %v973_v56 = vadd.f32 %v2867_v58, %v878_v51 }
  0xee   : > { %v1256_v32 = vpop.f32.mrf.mxu2 }
  0xef   : > { %v1273_v52 = vadd.f32 %v1256_v32, %v1178_v50 }
  0xf2   : > { %v865_v1 = vpop.f32.mrf.mxu3  ;;  %v2875_v3 = vpop.f32.mrf.mxu0 }
  0xf3   : > { %v879_v2 = vadd.f32 %v865_v1, %v784_v37 }
  0xf5   : > { %v2878_v4 = vadd.f32 %v960_v62, %v879_v2 }
  0xf6   : > { %v1258_v49 = vpop.f32.mrf.mxu2 }
  0xfa   : > { %v2890_v8 = vpop.f32.mrf.mxu3  ;;  %v965_v9 = vpop.f32.mrf.mxu0 }
  0xfe   : > { %v1261_v7 = vpop.f32.mrf.mxu2 }
 0x102   : > { %v870_v12 = vpop.f32.mrf.mxu3  ;;  %v2893_v14 = vpop.f32.mrf.mxu0 }
 0x103   : > { %v881_v13 = vadd.f32 %v870_v12, %v786_v46  ;;  %v1163_v46 = vpop.f32.mrf.mxu1 }
 0x104   : > { %v1179_v2 = vadd.f32 %v1163_v46, %v973_v56 }
 0x105   : > { %v2895_v15 = vadd.f32 %v965_v9, %v881_v13  ;;  %v785_v13 = vadd.f32 %v2854_v41, %v572_v11 }
 0x106   : > { %v1274_v9 = vadd.f32 %v1258_v49, %v1179_v2  ;;  %v1263_v28 = vpop.f32.mrf.mxu2 }
 0x10a   : > { %v2898_v19 = vpop.f32.mrf.mxu3  ;;  %v1552_v20 = vpop.f32.mrf.mxu0 }
 0x10b   : > { %v1166_v1 = vpop.f32.mrf.mxu1 }
 0x10c   : > { %v1180_v18 = vadd.f32 %v1166_v1, %v2878_v4 }
 0x10e   : > { %v1275_v26 = vadd.f32 %v1261_v7, %v1180_v18 }
 0x112   : > { %v1346_v27 = vpop.f32.mrf.mxu3  ;;  %v1554_v31 = vpop.f32.mrf.mxu0 }
 0x113   : > { %v1366_v30 = vadd.f32 %v1346_v27, %v1271_v24  ;;  %v1168_v24 = vpop.f32.mrf.mxu1 }
 0x115   : > { %v1572_v37 = vadd.f32 %v1552_v20, %v1366_v30  ;;  %v880_v20 = vadd.f32 %v2890_v8, %v785_v13  ;;  %v2970_v13 = vld [vmem:[%s3057_s7] ss:$0 sm:$0xff] }
 0x117   : > { %v1584_v40 = vmul.f32 %v2904_v34, %v1572_v37  ;;  %v975_v29 = vadd.f32 %v2875_v3, %v880_v20 }
 0x119   : > { %v1596_v53 = vadd.f32 %v2913_v42, %v1584_v40  ;;  %v1181_v33 = vadd.f32 %v1168_v24, %v975_v29 }
 0x11a   : > { %v1348_v38 = vpop.f32.mrf.mxu3  ;;  %v1557_v45 = vpop.f32.mrf.mxu0 }
 0x11b   : > { %v1367_v44 = vadd.f32 %v1348_v38, %v1272_v36  ;;  %v1604_v57 = vmax.f32 %v1596_v53, 0.0  ;;  %v1276_v37 = vadd.f32 %v1263_v28, %v1181_v33  ;;  %v1171_v35 = vpop.f32.mrf.mxu1  ;;  %v577_v38 = vadd.f32 %v2880_v5, %v2859_v43 }
 0x11c   : > { %v1182_v46 = vadd.f32 %v1171_v35, %v2895_v15 }
 0x11d   : > { %v1573_v48 = vadd.f32 %v1554_v31, %v1367_v44  ;;  %v1266_v44 = vpop.f32.mrf.mxu2  ;;  %v787_v3 = vadd.f32 %v2882_v6, %v577_v38 }
 0x11e   : > { %v1277_v50 = vadd.f32 %v1266_v44, %v1182_v46 }
 0x11f   : > { %v1585_v0 = vmul.f32 %v2904_v34, %v1573_v48  ;;  %v882_v47 = vadd.f32 %v2898_v19, %v787_v3 }
 0x121   : > { %v1597_v54 = vadd.f32 %v2913_v42, %v1585_v0  ;;  %v977_v5 = vadd.f32 %v2893_v14, %v882_v47 }
 0x122   : > { %v1351_v55 = vpop.f32.mrf.mxu3  ;;  %v1559_v63 = vpop.f32.mrf.mxu0 }
 0x123   : > { %v1605_v60 = vmax.f32 %v1597_v54, 0.0  ;;  %v1368_v62 = vadd.f32 %v1351_v55, %v1273_v52  ;;  %v1173_v6 = vpop.f32.mrf.mxu1 }
 0x124   : > { %v1183_v15 = vadd.f32 %v1173_v6, %v977_v5 }
 0x125   : > { %v1612_v25 = vpack.c.bf16 %v1605_v60, %v1604_v57  ;;  %v1574_v59 = vadd.f32 %v1557_v45, %v1368_v62  ;;  %v1268_v56 = vpop.f32.mrf.mxu2 }
 0x126   : > { %v1278_v19 = vadd.f32 %v1268_v56, %v1183_v15 }
 0x127   : > { %2261 = vmatmul.msk.bf16.vlgmr.msra.gmra.mxu1 %vm464_vm0, %v1612_v25  ;;  %v1586_v12 = vmul.f32 %v2904_v34, %v1574_v59 }
 0x129   : > { %v1598_v23 = vadd.f32 %v2913_v42, %v1586_v12  ;;  %v2954_v12 = vld [vmem:[%s3059_s9] ss:$0 sm:$0xff] }
 0x12a   : > { %v1353_v10 = vpop.f32.mrf.mxu3  ;;  %v1562_v17 = vpop.f32.mrf.mxu0 }
 0x12b   : > { %v1369_v58 = vadd.f32 %v1353_v10, %v1274_v9  ;;  %v1606_v41 = vmax.f32 %v1598_v23, 0.0 }
 0x12d   : > { %v1575_v16 = vadd.f32 %v1559_v63, %v1369_v58 }
 0x12f   : > { %v1587_v21 = vmul.f32 %v2904_v34, %v1575_v16 }
 0x131   : > { %v1599_v22 = vadd.f32 %v2913_v42, %v1587_v21 }
 0x132   : > { %v1356_v27 = vpop.f32.mrf.mxu3  ;;  %v1564_v8 = vpop.f32.mrf.mxu0 }
 0x133   : > { %v1370_v30 = vadd.f32 %v1356_v27, %v1275_v26  ;;  %v1607_v31 = vmax.f32 %v1599_v22, 0.0  ;;  %v1779_v10 = vpop.f32.mrf.mxu2 }
 0x134   : > { %v1803_v58 = vmul.f32 %v2954_v12, %v1779_v10 }
 0x135   : > { %v1613_v32 = vpack.c.bf16 %v1607_v31, %v1606_v41  ;;  %v1576_v4 = vadd.f32 %v1562_v17, %v1370_v30 }
 0x137   : > { %2262 = vmatmul.msk.bf16.gmra.mxu1 %vm464_vm0, %v1613_v32  ;;  %v1588_v39 = vmul.f32 %v2904_v34, %v1576_v4 }
 0x139   : > { %v1600_v49 = vadd.f32 %v2913_v42, %v1588_v39 }
 0x13a   : > { %v1358_v36 = vpop.f32.mrf.mxu3  ;;  %v1567_v53 = vpop.f32.mrf.mxu0 }
 0x13b   : > { %v1371_v40 = vadd.f32 %v1358_v36, %v1276_v37  ;;  %v1608_v52 = vmax.f32 %v1600_v49, 0.0  ;;  %v1781_v11 = vpop.f32.mrf.mxu2 }
 0x13c   : > { %v1804_v26 = vmul.f32 %v2954_v12, %v1781_v11 }
 0x13d   : > { %v1577_v45 = vadd.f32 %v1564_v8, %v1371_v40 }
 0x13f   : > { %v1589_v48 = vmul.f32 %v2904_v34, %v1577_v45 }
 0x141   : > { %v1601_v51 = vadd.f32 %v2913_v42, %v1589_v48 }
 0x142   : > { %v1361_v43 = vpop.f32.mrf.mxu3  ;;  %v1569_v25 = vpop.f32.mrf.mxu0 }
 0x143   : > { %v1372_v0 = vadd.f32 %v1361_v43, %v1277_v50  ;;  %v1609_v54 = vmax.f32 %v1601_v51, 0.0  ;;  %v1784_v20 = vpop.f32.mrf.mxu2 }
 0x144   : > { %v1805_v31 = vmul.f32 %v2954_v12, %v1784_v20 }
 0x145   : > { %v1614_v55 = vpack.c.bf16 %v1609_v54, %v1608_v52  ;;  %v1578_v57 = vadd.f32 %v1567_v53, %v1372_v0 }
 0x147   : > { %2263 = vmatmul.msk.bf16.gmra.mxu1 %vm464_vm0, %v1614_v55  ;;  %v1590_v62 = vmul.f32 %v2904_v34, %v1578_v57 }
 0x149   : > { %v1602_v2 = vadd.f32 %v2913_v42, %v1590_v62 }
 0x14a   : > { %v1363_v60 = vpop.f32.mrf.mxu3 }
 0x14b   : > { %v1373_v63 = vadd.f32 %v1363_v60, %v1278_v19  ;;  %v1610_v61 = vmax.f32 %v1602_v2, 0.0  ;;  %v1786_v30 = vpop.f32.mrf.mxu2 }
 0x14c   : > { %v1806_v39 = vmul.f32 %v2954_v12, %v1786_v30 }
 0x14d   : > { %v1579_v1 = vadd.f32 %v1569_v25, %v1373_v63 }
 0x14f   : > { %v1591_v14 = vmul.f32 %v2904_v34, %v1579_v1  ;;  %v2960_v34 = vld [vmem:[%s3060_s10] ss:$0 sm:$0xff] }
 0x150   : > { %v1815_v17 = vadd.f32 %v2960_v34, %v1803_v58  ;;  %v1816_v27 = vadd.f32 %v2960_v34, %v1804_v26  ;;  %v1817_v4 = vadd.f32 %v2960_v34, %v1805_v31  ;;  %v1818_v3 = vadd.f32 %v2960_v34, %v1806_v39 }
 0x151   : > { %v1603_v59 = vadd.f32 %v2913_v42, %v1591_v14  ;;  %v2965_v42 = vld [vmem:[%s3056_s6] ss:$0 sm:$0xff] }
 0x153   : > { %v1611_v7 = vmax.f32 %v1603_v59, 0.0  ;;  %v1789_v36 = vpop.f32.mrf.mxu2 }
 0x154   : > { %v1807_v47 = vmul.f32 %v2954_v12, %v1789_v36 }
 0x155   : > { %v1615_v9 = vpack.c.bf16 %v1611_v7, %v1610_v61 }
 0x156   : > { %v1819_v51 = vadd.f32 %v2960_v34, %v1807_v47 }
 0x157   : > { %2264 = vmatmul.msk.bf16.gmra.mxu1 %vm464_vm0, %v1615_v9 }
 0x15b   : > { %v1791_v50 = vpop.f32.mrf.mxu2 }
 0x15c   : > { %v1808_v52 = vmul.f32 %v2954_v12, %v1791_v50 }
 0x15e   : > { %v1820_v56 = vadd.f32 %v2960_v34, %v1808_v52 }
 0x16f   : > { %v1794_v55 = vpop.f32.mrf.mxu2 }
 0x170   : > { %v1809_v19 = vmul.f32 %v2954_v12, %v1794_v55 }
 0x172   : > { %v1821_v63 = vadd.f32 %v2960_v34, %v1809_v19 }
 0x177   : > { %v1796_v14 = vpop.f32.mrf.mxu2 }
 0x178   : > { %v1810_v61 = vmul.f32 %v2954_v12, %v1796_v14 }
 0x17a   : > { %v1822_v10 = vadd.f32 %v2960_v34, %v1810_v61 }
 0x1a4   : > { %v1653_v16 = vpop.f32.mrf.mxu1 }
 0x1a5   : > { %v1677_v18 = vmul.f32 %v2965_v42, %v1653_v16 }
 0x1a7   : > { %v1689_v21 = vadd.f32 %v2970_v13, %v1677_v18 }
 0x1a9   : > { %v1823_v23 = vadd.f32 %v1815_v17, %v1689_v21 }
 0x1ab   : > { %v1831_v24 = vmax.f32 %v1823_v23, 0.0 }
 0x1ac   : > { %v1655_v22 = vpop.f32.mrf.mxu1 }
 0x1ad   : > { %1839 = vst [vmem:[%s2979_s22] sm:$0xff] %v1831_v24  ;;  %v1678_v28 = vmul.f32 %v2965_v42, %v1655_v22 }
 0x1af   : > { %v1690_v29 = vadd.f32 %v2970_v13, %v1678_v28 }
 0x1b1   : > { %v1824_v41 = vadd.f32 %v1816_v27, %v1690_v29 }
 0x1b3   : > { %v1832_v32 = vmax.f32 %v1824_v41, 0.0 }
 0x1b4   : > { %v1658_v33 = vpop.f32.mrf.mxu1 }
 0x1b5   : > { %1840 = vst [vmem:[%s2979_s22 + $0x8] sm:$0xff] %v1832_v32  ;;  %v1679_v8 = vmul.f32 %v2965_v42, %v1658_v33 }
 0x1b7   : > { %v1691_v37 = vadd.f32 %v2970_v13, %v1679_v8 }
 0x1b9   : > { %v1825_v35 = vadd.f32 %v1817_v4, %v1691_v37 }
 0x1bb   : > { %v1833_v38 = vmax.f32 %v1825_v35, 0.0 }
 0x1bc   : > { %v1660_v40 = vpop.f32.mrf.mxu1 }
 0x1bd   : > { %1841 = vst [vmem:[%s2979_s22 + $0x10] sm:$0xff] %v1833_v38  ;;  %v1680_v44 = vmul.f32 %v2965_v42, %v1660_v40 }
 0x1bf   : > { %v1692_v45 = vadd.f32 %v2970_v13, %v1680_v44 }
 0x1c1   : > { %v1826_v46 = vadd.f32 %v1818_v3, %v1692_v45 }
 0x1c3   : > { %v1834_v48 = vmax.f32 %v1826_v46, 0.0 }
 0x1c4   : > { %v1663_v49 = vpop.f32.mrf.mxu1 }
 0x1c5   : > { %1842 = vst [vmem:[%s2979_s22 + $0x18] sm:$0xff] %v1834_v48  ;;  %v1681_v53 = vmul.f32 %v2965_v42, %v1663_v49 }
 0x1c7   : > { %v1693_v43 = vadd.f32 %v2970_v13, %v1681_v53 }
 0x1c9   : > { %v1827_v5 = vadd.f32 %v1819_v51, %v1693_v43 }
 0x1cb   : > { %v1835_v0 = vmax.f32 %v1827_v5, 0.0 }
 0x1cc   : > { %v1665_v54 = vpop.f32.mrf.mxu1 }
 0x1cd   : > { %1843 = vst [vmem:[%s2979_s22 + $0x20] sm:$0xff] %v1835_v0  ;;  %v1682_v6 = vmul.f32 %v2965_v42, %v1665_v54 }
 0x1cf   : > { %v1694_v15 = vadd.f32 %v2970_v13, %v1682_v6 }
 0x1d1   : > { %v1828_v57 = vadd.f32 %v1820_v56, %v1694_v15 }
 0x1d3   : > { %v1836_v60 = vmax.f32 %v1828_v57, 0.0 }
 0x1d4   : > { %v1668_v62 = vpop.f32.mrf.mxu1 }
 0x1d5   : > { %1844 = vst [vmem:[%s2979_s22 + $0x28] sm:$0xff] %v1836_v60  ;;  %v1683_v25 = vmul.f32 %v2965_v42, %v1668_v62 }
 0x1d7   : > { %v1695_v1 = vadd.f32 %v2970_v13, %v1683_v25 }
 0x1d9   : > { %v1829_v2 = vadd.f32 %v1821_v63, %v1695_v1 }
 0x1db   : > { %v1837_v59 = vmax.f32 %v1829_v2, 0.0 }
 0x1dc   : > { %v1670_v7 = vpop.f32.mrf.mxu1 }
 0x1dd   : > { %1845 = vst [vmem:[%s2979_s22 + $0x30] sm:$0xff] %v1837_v59  ;;  %v1684_v9 = vmul.f32 %v2965_v42, %v1670_v7 }
 0x1df   : > { %v1696_v11 = vadd.f32 %v2970_v13, %v1684_v9 }
 0x1e1   : > { %v1830_v58 = vadd.f32 %v1822_v10, %v1696_v11 }
 0x1e3   : > { %v1838_v16 = vmax.f32 %v1830_v58, 0.0 }
 0x1e5   : > { %1846 = vst [vmem:[%s2979_s22 + $0x38] sm:$0xff] %v1838_v16 }
 0x1e6   : > { %2441 = shalt.err (!%p2438_p3)
}
 0x1e7   : > { %s2478_s15 = smov 128   ;;  %s2479_s22 = smov 8  }
 0x1e8   : > { %2367 = dma.vmem_to_hbm [thread:$0]  (%p2578_p5), %s1861_s13, 1024, %s1863_s24, %s1848_s21, %s2478_s15, %s2478_s15, %s2479_s22  }
 0x1e9 PF: > { %p2373_p4 = scmp.ge.s32.totalorder %s2476_s20, 2  ;;  %s1877_s25 = sand.u32 1, %s2464_s17  }
 0x1ea   : > { %s1878_s0 = scalar_lea.sflag [#allocation3], %s1877_s25 }
 0x1eb   : > { %p2370_p7 = pnand %p2373_p4, %p2582_p6 }
 0x1ed   : > { %p2371_p8 = pneg %p2370_p7 }
 0x1ef   : > { %2459 = dma.done.wait (%p2371_p8), %s1878_s0, 1024  }
 0x1f0   : > { %2461 = vsyncadd (%p2371_p8), %s1878_s0, 4294966272  ;;  %p21_p9 = scmp.ge.s32.totalorder %s2565_s23, 4   ;;  %s3068_s17 = smov %s2468_s18 }
 0x1f1   : > { %s3069_s18 = smov %s2472_s19  ;;  %s3070_s19 = smov %s2576_s26 }
 0x1f2   : > { %s3071_s20 = smov %s2565_s23  ;;  %23 = sbr.rel (!%p21_p9) target bundleno = 5 (0x5), region = 115 }
 0x1f7   :  { %1884 = vsyncpa [#allocation3], 1 }
 0x1f8   :  { %1886 = vsyncpa [#allocation3 + $0x1], 1 }

</bundles_post_ra>
